<compile_context>
chip_gen: v5e
topology: v5e:2x2
jax: 0.10.0
libtpu: 0.0.40
codegen_flags: <defaults>
</compile_context>

<pallas_src>
import math
from functools import partial

import jax
import jax.numpy as jnp
from jax import lax
from jax.experimental import pallas as pl
from jax.experimental.pallas import tpu as pltpu

EPS = 1e-5                      # PyTorch LayerNorm default eps
NEG_INF = -1e30                 # finite "-inf": no NaNs under KV tiling
VMEM_LIMIT = 48 * 1024 * 1024   # > 16/32 MiB defaults, < 64 MiB v7x physical


# ---------------------------------------------------------------------------
# Tiling helpers
# ---------------------------------------------------------------------------
def _seq_tile(s, preferred=256):
    """Sequence tile: full length when small, else 256 (128 fallback)."""
    if s <= preferred:
        return s
    for t in (preferred, 128):
        if s % t == 0:
            return t
    raise ValueError(f"sequence length {s} must be a multiple of 128")


def _vocab_tile(v):
    if v <= 2048:
        return v
    assert v % 512 == 0, "large vocab must be a multiple of 512"
    return 512


def _head_group(n_head, dh):
    """Heads per attention grid step; group lane width must be a multiple of
    128 or equal E (full last dim) so attention blocks are legal & lane-dense."""
    if dh % 128 == 0:
        return 1
    if dh < 128 and 128 % dh == 0:
        hg = 128 // dh
        if n_head % hg == 0:
            return hg
    return n_head                       # fallback: all heads (width == E)


def _cparams(sem):
    return pltpu.CompilerParams(dimension_semantics=sem,
                                vmem_limit_bytes=VMEM_LIMIT)


def _layernorm(v, w, b):
    mu = jnp.mean(v, axis=-1, keepdims=True)
    var = jnp.mean((v - mu) ** 2, axis=-1, keepdims=True)
    return (v - mu) * lax.rsqrt(var + EPS) * w + b


# ---------------------------------------------------------------------------
# Kernels
# ---------------------------------------------------------------------------
def ln_qkv_kernel(x_ref, ln_w_ref, ln_b_ref, wqkv_ref, bqkv_ref,
                  q_ref, k_ref, v_ref, *, E):
    """Pre-norm + fused QKV projection for one (1, TS, E) activation tile.
    One (TS,E)@(E,3E) MXU matmul; 1/sqrt(dh) is pre-folded into the Q slice."""
    x = x_ref[0].astype(jnp.float32)
    h = _layernorm(x, ln_w_ref[0], ln_b_ref[0]).astype(wqkv_ref.dtype)
    qkv = (jnp.dot(h, wqkv_ref[...], preferred_element_type=jnp.float32)
           + bqkv_ref[0])
    q_ref[0] = qkv[:, :E].astype(q_ref.dtype)
    k_ref[0] = qkv[:, E:2 * E].astype(k_ref.dtype)
    v_ref[0] = qkv[:, 2 * E:].astype(v_ref.dtype)


def flash_attn_kernel(q_ref, k_ref, v_ref, o_ref, m_sc, l_sc, acc_sc,
                      *, tq, tk, dh, hg):
    """Flash-style causal attention for one (batch, head-group, q-tile).
    KV tiles are the innermost ("arbitrary") axis; online softmax state lives
    in f32 VMEM scratch.  Above-diagonal tiles do no compute (and, thanks to
    the clamped kv index_map in the wrapper, no DMA)."""
    qi = pl.program_id(2)
    ki = pl.program_id(3)

    @pl.when(ki == 0)
    def _init():
        m_sc[...] = jnp.full(m_sc.shape, NEG_INF, m_sc.dtype)
        l_sc[...] = jnp.zeros(l_sc.shape, l_sc.dtype)
        acc_sc[...] = jnp.zeros(acc_sc.shape, acc_sc.dtype)

    def _update(masked):
        qb = q_ref[0]                                    # (tq, hg*dh)
        kb = k_ref[0]
        vb = v_ref[0]
        for h in range(hg):                              # static unroll
            q = qb[:, h * dh:(h + 1) * dh]               # (tq, dh)
            k = kb[:, h * dh:(h + 1) * dh]
            v = vb[:, h * dh:(h + 1) * dh]
            s = lax.dot_general(q, k, (((1,), (1,)), ((), ())),
                                preferred_element_type=jnp.float32)
            if masked:                                   # diagonal tiles only
                row = qi * tq + lax.broadcasted_iota(jnp.int32, (tq, tk), 0)
                col = ki * tk + lax.broadcasted_iota(jnp.int32, (tq, tk), 1)
                s = jnp.where(col <= row, s, NEG_INF)
            m_prev = m_sc[h]
            m_new = jnp.maximum(m_prev, jnp.max(s, axis=-1, keepdims=True))
            alpha = jnp.exp(m_prev - m_new)
            p = jnp.exp(s - m_new)
            l_sc[h] = alpha * l_sc[h] + jnp.sum(p, axis=-1, keepdims=True)
            acc_sc[h] = alpha * acc_sc[h] + jnp.dot(
                p.astype(v.dtype), v, preferred_element_type=jnp.float32)
            m_sc[h] = m_new

    @pl.when(ki < qi)          # strictly below the diagonal: no mask needed
    def _below():
        _update(False)

    @pl.when(ki == qi)         # diagonal tile: mask, then finalize (last
    def _diag():               # contributing KV tile for this query tile)
        _update(True)
        for h in range(hg):
            o_ref[0, :, h * dh:(h + 1) * dh] = (
                acc_sc[h] * pl.reciprocal(l_sc[h], approx=True)
            ).astype(o_ref.dtype)
        # (Stores target the resident VMEM output block; the HBM writeback is
        #  still one lane-dense (TS, hg*dh) tile.)


def proj_ffn_kernel(x_ref, ctx_ref, wo_ref, bo_ref, ln2w_ref, ln2b_ref,
                    w1_ref, b1_ref, w2_ref, b2_ref, o_ref):
    """attn output projection + residual, then pre-norm FFN + residual.
    Residuals / LN stats in f32 regardless of the activation dtype."""
    x = x_ref[0].astype(jnp.float32)
    ctx = ctx_ref[0].astype(wo_ref.dtype)
    x = x + jnp.dot(ctx, wo_ref[...], preferred_element_type=jnp.float32) + bo_ref[0]
    h = _layernorm(x, ln2w_ref[0], ln2b_ref[0]).astype(w1_ref.dtype)
    ff = jnp.dot(h, w1_ref[...], preferred_element_type=jnp.float32) + b1_ref[0]
    ff = jnp.maximum(ff, 0.0).astype(w2_ref.dtype)
    ff = jnp.dot(ff, w2_ref[...], preferred_element_type=jnp.float32) + b2_ref[0]
    o_ref[0] = (x + ff).astype(o_ref.dtype)


def fc_kernel(x_ref, w_ref, b_ref, o_ref):
    """Final vocab projection: (1,TS,E) @ (E,TV) + (1,TV) -> (1,TS,TV)."""
    x = x_ref[0].astype(w_ref.dtype)
    o_ref[0] = (jnp.dot(x, w_ref[...], preferred_element_type=jnp.float32)
                + b_ref[0]).astype(o_ref.dtype)


# ---------------------------------------------------------------------------
# pallas_call wrappers
# ---------------------------------------------------------------------------
def run_ln_qkv(x, ln_w, ln_b, wqkv_t, bqkv, *, act_dtype):
    B, S, E = x.shape
    ts = _seq_tile(S)
    grid = (B, S // ts)
    x_spec = pl.BlockSpec((1, ts, E), lambda b, s: (b, s, 0))
    out_sds = jax.ShapeDtypeStruct((B, S, E), act_dtype)
    return pl.pallas_call(
        partial(ln_qkv_kernel, E=E),
        out_shape=(out_sds, out_sds, out_sds),
        grid=grid,
        in_specs=[x_spec,
                  pl.BlockSpec((1, E), lambda b, s: (0, 0)),
                  pl.BlockSpec((1, E), lambda b, s: (0, 0)),
                  pl.BlockSpec((E, 3 * E), lambda b, s: (0, 0)),
                  pl.BlockSpec((1, 3 * E), lambda b, s: (0, 0))],
        out_specs=(x_spec, x_spec, x_spec),
        compiler_params=_cparams(("parallel", "parallel")),
    )(x, ln_w, ln_b, wqkv_t, bqkv)


def run_flash_attention(q, k, v, *, n_head):
    """q, k, v, output: (B, S, E) -- no head split/merge transposes."""
    B, S, E = q.shape
    dh = E // n_head
    hg = _head_group(n_head, dh)
    gw = hg * dh                       # group lane width (128-multiple or E)
    ng = E // gw
    ts = _seq_tile(S, preferred=256)   # v5e: 128 also fine (4x128 MXU)
    nt = S // ts
    grid = (B, ng, nt, nt)
    q_spec = pl.BlockSpec((1, ts, gw), lambda b, g, qi, ki: (b, qi, g))
    # Causal DMA clamp: above-diagonal steps re-reference the already-resident
    # K/V block, so Pallas issues no copy for tiles pl.when skips.
    kv_spec = pl.BlockSpec((1, ts, gw),
                           lambda b, g, qi, ki: (b, jnp.minimum(ki, qi), g))
    return pl.pallas_call(
        partial(flash_attn_kernel, tq=ts, tk=ts, dh=dh, hg=hg),
        out_shape=jax.ShapeDtypeStruct((B, S, E), q.dtype),
        grid=grid,
        in_specs=[q_spec, kv_spec, kv_spec],
        out_specs=pl.BlockSpec((1, ts, gw), lambda b, g, qi, ki: (b, qi, g)),
        scratch_shapes=[pltpu.VMEM((hg, ts, 1), jnp.float32),    # running max
                        pltpu.VMEM((hg, ts, 1), jnp.float32),    # running sum
                        pltpu.VMEM((hg, ts, dh), jnp.float32)],  # accumulator
        compiler_params=_cparams(
            ("parallel", "parallel", "parallel", "arbitrary")),
    )(q, k, v)


def run_proj_ffn(x, ctx, wo_t, bo, ln2w, ln2b, w1_t, b1, w2_t, b2):
    B, S, E = x.shape
    F = w1_t.shape[1]
    ts = _seq_tile(S)
    grid = (B, S // ts)
    act_spec = pl.BlockSpec((1, ts, E), lambda b, s: (b, s, 0))
    vecE = pl.BlockSpec((1, E), lambda b, s: (0, 0))
    vecF = pl.BlockSpec((1, F), lambda b, s: (0, 0))
    return pl.pallas_call(
        proj_ffn_kernel,
        out_shape=jax.ShapeDtypeStruct((B, S, E), x.dtype),
        grid=grid,
        in_specs=[act_spec, act_spec,
                  pl.BlockSpec((E, E), lambda b, s: (0, 0)), vecE,
                  vecE, vecE,
                  pl.BlockSpec((E, F), lambda b, s: (0, 0)), vecF,
                  pl.BlockSpec((F, E), lambda b, s: (0, 0)), vecE],
        out_specs=act_spec,
        compiler_params=_cparams(("parallel", "parallel")),
    )(x, ctx, wo_t, bo, ln2w, ln2b, w1_t, b1, w2_t, b2)


def run_fc(x, w_t, b):
    B, S, E = x.shape
    V = w_t.shape[1]
    ts = _seq_tile(S)
    tv = _vocab_tile(V)
    # Vocab axis OUTERMOST: each (E,tv) weight tile is fetched from HBM once
    # and revisited across all (b, s) steps (constant block index => no re-DMA).
    grid = (V // tv, B, S // ts)
    return pl.pallas_call(
        fc_kernel,
        out_shape=jax.ShapeDtypeStruct((B, S, V), jnp.float32),
        grid=grid,
        in_specs=[pl.BlockSpec((1, ts, E), lambda vi, b, s: (b, s, 0)),
                  pl.BlockSpec((E, tv), lambda vi, b, s: (0, vi)),
                  pl.BlockSpec((1, tv), lambda vi, b, s: (0, vi))],
        out_specs=pl.BlockSpec((1, ts, tv), lambda vi, b, s: (b, s, vi)),
        compiler_params=_cparams(("parallel", "parallel", "parallel")),
    )(x, w_t, b)


# ---------------------------------------------------------------------------
# Parameter construction / preparation
# ---------------------------------------------------------------------------
def sinusoidal_pe(max_len, embed_dim):
    position = jnp.arange(max_len, dtype=jnp.float32)[:, None]
    div = jnp.power(10000.0,
                    jnp.arange(0, embed_dim, 2, dtype=jnp.float32) / embed_dim)
    pe = jnp.zeros((max_len, embed_dim), jnp.float32)
    pe = pe.at[:, 0::2].set(jnp.sin(position / div))
    pe = pe.at[:, 1::2].set(jnp.cos(position / div))
    return pe


def _linear_init(key, out_f, in_f):
    k1, k2 = jax.random.split(key)
    bound = 1.0 / math.sqrt(in_f)
    w = jax.random.uniform(k1, (out_f, in_f), jnp.float32, -bound, bound)
    b = jax.random.uniform(k2, (1, out_f), jnp.float32, -bound, bound)
    return w, b


def init_params(key, vocab_size, embed_dim, n_blocks, n_head, ff_dim):
    keys = jax.random.split(key, 2 + n_blocks)
    params = {'embed': 0.02 * jax.random.normal(keys[0], (vocab_size, embed_dim),
                                                jnp.float32)}
    blocks = []
    for i in range(n_blocks):
        bk = jax.random.split(keys[2 + i], 4)
        wqkv, bqkv = _linear_init(bk[0], 3 * embed_dim, embed_dim)
        wo, bo = _linear_init(bk[1], embed_dim, embed_dim)
        w1, b1 = _linear_init(bk[2], ff_dim, embed_dim)
        w2, b2 = _linear_init(bk[3], embed_dim, ff_dim)
        blocks.append(dict(
            wqkv=wqkv, bqkv=bqkv, wo=wo, bo=bo,
            ln1w=jnp.ones((1, embed_dim), jnp.float32),
            ln1b=jnp.zeros((1, embed_dim), jnp.float32),
            ln2w=jnp.ones((1, embed_dim), jnp.float32),
            ln2b=jnp.zeros((1, embed_dim), jnp.float32),
            w1=w1, b1=b1, w2=w2, b2=b2))
    params['blocks'] = blocks
    params['fc_w'], params['fc_b'] = _linear_init(keys[1], vocab_size, embed_dim)
    return params


def prepare_weights(params, n_head, dtype=jnp.float32):
    """One-time prep: transpose PyTorch (out,in) -> (in,out), keep the fused
    (E,3E) QKV weight, fold 1/sqrt(dh) into the Q projection, and (optionally)
    down-cast matmul weights to bf16 (accumulation stays f32 in the kernels)."""
    E = params['fc_w'].shape[1]
    dh = E // n_head
    scale = 1.0 / math.sqrt(dh)
    s_vec = jnp.concatenate([jnp.full((E,), scale, jnp.float32),
                             jnp.ones((2 * E,), jnp.float32)])
    dev = {'embed': params['embed'],
           'fc_w_t': params['fc_w'].T.astype(dtype),
           'fc_b': params['fc_b']}
    blocks = []
    for blk in params['blocks']:
        wqkv, bqkv = blk['wqkv'], blk['bqkv']
        blocks.append(dict(
            wqkv_t=(wqkv * s_vec[:, None]).T.astype(dtype),   # (E, 3E)
            bqkv=bqkv * s_vec[None, :],
            wo_t=blk['wo'].T.astype(dtype), bo=blk['bo'],
            ln1w=blk['ln1w'], ln1b=blk['ln1b'],
            ln2w=blk['ln2w'], ln2b=blk['ln2b'],
            w1_t=blk['w1'].T.astype(dtype), b1=blk['b1'],
            w2_t=blk['w2'].T.astype(dtype), b2=blk['b2']))
    dev['blocks'] = blocks
    return dev


# ---------------------------------------------------------------------------
# Full forward (embedding gather + PE in plain JAX; everything else in Pallas)
# ---------------------------------------------------------------------------
def transformer_decoder_forward(token_ids, dev, pe, *, n_head,
                                act_dtype=jnp.float32):
    x = dev['embed'][token_ids]                   # (B, S, E) embedding gather
    B, S, E = x.shape
    x = (x + pe[None, :S, :]).astype(act_dtype)   # PE; activations in act_dtype
    for blk in dev['blocks']:
        q, k, v = run_ln_qkv(x, blk['ln1w'], blk['ln1b'],
                             blk['wqkv_t'], blk['bqkv'], act_dtype=act_dtype)
        ctx = run_flash_attention(q, k, v, n_head=n_head)   # stays (B,S,E)
        x = run_proj_ffn(x, ctx, blk['wo_t'], blk['bo'],
                         blk['ln2w'], blk['ln2b'],
                         blk['w1_t'], blk['b1'], blk['w2_t'], blk['b2'])
    return run_fc(x, dev['fc_w_t'], dev['fc_b'])


# ---------------------------------------------------------------------------
# Pure-JAX reference (same math) for verification
# ---------------------------------------------------------------------------
def reference_forward(token_ids, params, pe, n_head):
    x = params['embed'][token_ids]
    B, S, E = x.shape
    dh = E // n_head
    x = x + pe[None, :S, :]
    mask = jnp.tril(jnp.ones((S, S), bool))
    for blk in params['blocks']:
        h = (x - x.mean(-1, keepdims=True)) * lax.rsqrt(
            x.var(-1, keepdims=True) + EPS) * blk['ln1w'][0] + blk['ln1b'][0]
        qkv = h @ blk['wqkv'].T + blk['bqkv'][0]
        q, k, v = jnp.split(qkv, 3, axis=-1)
        q = q.reshape(B, S, n_head, dh).transpose(0, 2, 1, 3)
        k = k.reshape(B, S, n_head, dh).transpose(0, 2, 1, 3)
        v = v.reshape(B, S, n_head, dh).transpose(0, 2, 1, 3)
        s = (q @ jnp.swapaxes(k, -1, -2)) / math.sqrt(dh)
        s = jnp.where(mask, s, -jnp.inf)
        p = jax.nn.softmax(s, axis=-1)
        attn = (p @ v).transpose(0, 2, 1, 3).reshape(B, S, E)
        x = x + attn @ blk['wo'].T + blk['bo'][0]
        h2 = (x - x.mean(-1, keepdims=True)) * lax.rsqrt(
            x.var(-1, keepdims=True) + EPS) * blk['ln2w'][0] + blk['ln2b'][0]
        ff = jax.nn.relu(h2 @ blk['w1'].T + blk['b1'][0]) @ blk['w2'].T + blk['b2'][0]
        x = x + ff
    return x @ params['fc_w'].T + params['fc_b'][0]


if __name__ == "__main__":
    vocab_size, embed_dim, n_blocks, n_head, ff_dim = 64, 32, 2, 4, 64
    B, S = 2, 8

    key = jax.random.PRNGKey(0)
    pkey, dkey = jax.random.split(key)
    params = init_params(pkey, vocab_size, embed_dim, n_blocks, n_head, ff_dim)
    pe = sinusoidal_pe(512, embed_dim)
    token_ids = jax.random.randint(dkey, (B, S), 0, vocab_size)

    with jax.default_matmul_precision('highest'):
        ref = jax.block_until_ready(
            reference_forward(token_ids, params, pe, n_head))

    # --- f32 path: bit-parity check against the reference --------------------
    dev32 = prepare_weights(params, n_head, dtype=jnp.float32)
    fwd32 = jax.jit(partial(transformer_decoder_forward, n_head=n_head,
                            act_dtype=jnp.float32))
    logits = jax.block_until_ready(fwd32(token_ids, dev32, pe))
    assert logits.shape == (B, S, vocab_size)
    assert bool(jnp.all(jnp.isfinite(logits))), "non-finite f32 output"
    err = float(jnp.max(jnp.abs(logits - ref)))
    assert err < 5e-2, f"f32 mismatch vs reference: max abs err {err}"

    # --- bf16 path (production setting on v5e/v6e/v7x): bf16 weights AND
    #     inter-kernel activations, f32 accumulators / LN / softmax inside.
    dev16 = prepare_weights(params, n_head, dtype=jnp.bfloat16)
    fwd16 = jax.jit(partial(transformer_decoder_forward, n_head=n_head,
                            act_dtype=jnp.bfloat16))
    logits16 = jax.block_until_ready(fwd16(token_ids, dev16, pe))
    assert bool(jnp.all(jnp.isfinite(logits16))), "non-finite bf16 output"
    err16 = float(jnp.max(jnp.abs(logits16 - ref)))
    assert err16 < 0.3, f"bf16 mismatch vs reference: max abs err {err16}"

    print("KERNEL_OK")
</pallas_src>

<mosaic_0001>
module attributes {stable_mosaic.version = 11 : i64} {
  func.func @ln_qkv_kernel(%arg0: i32, %arg1: i32, %arg2: memref<1x8x32xf32, #tpu.memory_space<vmem>>, %arg3: memref<1x32xf32, #tpu.memory_space<vmem>>, %arg4: memref<1x32xf32, #tpu.memory_space<vmem>>, %arg5: memref<32x96xf32, #tpu.memory_space<vmem>>, %arg6: memref<1x96xf32, #tpu.memory_space<vmem>>, %arg7: memref<1x8x32xf32, #tpu.memory_space<vmem>>, %arg8: memref<1x8x32xf32, #tpu.memory_space<vmem>>, %arg9: memref<1x8x32xf32, #tpu.memory_space<vmem>>) attributes {dimension_semantics = [#tpu.dimension_semantics<parallel>, #tpu.dimension_semantics<parallel>], iteration_bounds = array<i64: 2, 1>, scalar_prefetch = 0 : i64, scratch_operands = 0 : i64, tpu.core_type = #tpu.core_type<tc>, window_params = [{transform_indices = @transform_0, window_bounds = array<i64: 1, 8, 32>}, {pipeline_mode = #tpu.pipeline_mode<synchronous>, transform_indices = @transform_1, window_bounds = array<i64: 1, 32>}, {pipeline_mode = #tpu.pipeline_mode<synchronous>, transform_indices = @transform_2, window_bounds = array<i64: 1, 32>}, {pipeline_mode = #tpu.pipeline_mode<synchronous>, transform_indices = @transform_3, window_bounds = array<i64: 32, 96>}, {pipeline_mode = #tpu.pipeline_mode<synchronous>, transform_indices = @transform_4, window_bounds = array<i64: 1, 96>}, {transform_indices = @transform_5, window_bounds = array<i64: 1, 8, 32>}, {transform_indices = @transform_6, window_bounds = array<i64: 1, 8, 32>}, {transform_indices = @transform_7, window_bounds = array<i64: 1, 8, 32>}]} {
    %c0 = arith.constant 0 : index
    %c0_0 = arith.constant 0 : index
    %c0_1 = arith.constant 0 : index
    %0 = vector.load %arg2[%c0, %c0_0, %c0_1] : memref<1x8x32xf32, #tpu.memory_space<vmem>>, vector<1x8x32xf32>
    %1 = vector.shape_cast %0 : vector<1x8x32xf32> to vector<8x32xf32>
    %c0_2 = arith.constant 0 : index
    %c0_3 = arith.constant 0 : index
    %2 = vector.load %arg3[%c0_2, %c0_3] : memref<1x32xf32, #tpu.memory_space<vmem>>, vector<1x32xf32>
    %3 = vector.shape_cast %2 : vector<1x32xf32> to vector<32xf32>
    %c0_4 = arith.constant 0 : index
    %c0_5 = arith.constant 0 : index
    %4 = vector.load %arg4[%c0_4, %c0_5] : memref<1x32xf32, #tpu.memory_space<vmem>>, vector<1x32xf32>
    %5 = vector.shape_cast %4 : vector<1x32xf32> to vector<32xf32>
    %cst = arith.constant dense<0.000000e+00> : vector<8xf32>
    %6 = vector.multi_reduction <add>, %1, %cst [1] : vector<8x32xf32> to vector<8xf32>
    %7 = vector.shape_cast %6 : vector<8xf32> to vector<8x1xf32>
    %cst_6 = arith.constant 3.200000e+01 : f32
    %8 = vector.broadcast %cst_6 : f32 to vector<8x1xf32>
    %9 = arith.divf %7, %8 : vector<8x1xf32>
    %10 = vector.broadcast %9 : vector<8x1xf32> to vector<8x32xf32>
    %11 = arith.subf %1, %10 : vector<8x32xf32>
    %12 = arith.mulf %11, %11 : vector<8x32xf32>
    %cst_7 = arith.constant dense<0.000000e+00> : vector<8xf32>
    %13 = vector.multi_reduction <add>, %12, %cst_7 [1] : vector<8x32xf32> to vector<8xf32>
    %14 = vector.shape_cast %13 : vector<8xf32> to vector<8x1xf32>
    %cst_8 = arith.constant 3.200000e+01 : f32
    %15 = vector.broadcast %cst_8 : f32 to vector<8x1xf32>
    %16 = arith.divf %14, %15 : vector<8x1xf32>
    %17 = vector.broadcast %9 : vector<8x1xf32> to vector<8x32xf32>
    %18 = arith.subf %1, %17 : vector<8x32xf32>
    %cst_9 = arith.constant 9.99999974E-6 : f32
    %19 = vector.broadcast %cst_9 : f32 to vector<8x1xf32>
    %20 = arith.addf %16, %19 : vector<8x1xf32>
    %21 = math.rsqrt %20 : vector<8x1xf32>
    %22 = vector.broadcast %21 : vector<8x1xf32> to vector<8x32xf32>
    %23 = arith.mulf %18, %22 : vector<8x32xf32>
    %24 = vector.shape_cast %3 : vector<32xf32> to vector<1x32xf32>
    %25 = vector.broadcast %24 : vector<1x32xf32> to vector<8x32xf32>
    %26 = arith.mulf %23, %25 : vector<8x32xf32>
    %27 = vector.shape_cast %5 : vector<32xf32> to vector<1x32xf32>
    %28 = vector.broadcast %27 : vector<1x32xf32> to vector<8x32xf32>
    %29 = arith.addf %26, %28 : vector<8x32xf32>
    %c0_10 = arith.constant 0 : index
    %c0_11 = arith.constant 0 : index
    %30 = vector.load %arg5[%c0_10, %c0_11] : memref<32x96xf32, #tpu.memory_space<vmem>>, vector<32x96xf32>
    %cst_12 = arith.constant dense<0.000000e+00> : vector<8x96xf32>
    %31 = tpu.matmul %29, %30, %cst_12 {dimension_numbers = #tpu.dot_dimension_numbers<[1], [0], [0], [1], [0, 0, 1, 1], [], []>} : vector<8x32xf32>, vector<32x96xf32>, vector<8x96xf32> -> vector<8x96xf32>
    %c0_13 = arith.constant 0 : index
    %c0_14 = arith.constant 0 : index
    %32 = vector.load %arg6[%c0_13, %c0_14] : memref<1x96xf32, #tpu.memory_space<vmem>>, vector<1x96xf32>
    %33 = vector.shape_cast %32 : vector<1x96xf32> to vector<96xf32>
    %34 = vector.shape_cast %33 : vector<96xf32> to vector<1x96xf32>
    %35 = vector.broadcast %34 : vector<1x96xf32> to vector<8x96xf32>
    %36 = arith.addf %31, %35 : vector<8x96xf32>
    %37 = vector.extract_strided_slice %36 {offsets = [0, 0], sizes = [8, 32], strides = [1, 1]} : vector<8x96xf32> to vector<8x32xf32>
    %c0_15 = arith.constant 0 : index
    %c0_16 = arith.constant 0 : index
    %c0_17 = arith.constant 0 : index
    %38 = vector.load %arg7[%c0_15, %c0_16, %c0_17] : memref<1x8x32xf32, #tpu.memory_space<vmem>>, vector<1x8x32xf32>
    %39 = vector.shape_cast %38 : vector<1x8x32xf32> to vector<8x32xf32>
    %40 = vector.shape_cast %37 : vector<8x32xf32> to vector<1x8x32xf32>
    tpu.vector_store %arg7[%c0_15, %c0_16, %c0_17], %40 {strides = array<i32>} : memref<1x8x32xf32, #tpu.memory_space<vmem>>, vector<1x8x32xf32>,
    %41 = vector.extract_strided_slice %36 {offsets = [0, 32], sizes = [8, 32], strides = [1, 1]} : vector<8x96xf32> to vector<8x32xf32>
    %c0_18 = arith.constant 0 : index
    %c0_19 = arith.constant 0 : index
    %c0_20 = arith.constant 0 : index
    %42 = vector.load %arg8[%c0_18, %c0_19, %c0_20] : memref<1x8x32xf32, #tpu.memory_space<vmem>>, vector<1x8x32xf32>
    %43 = vector.shape_cast %42 : vector<1x8x32xf32> to vector<8x32xf32>
    %44 = vector.shape_cast %41 : vector<8x32xf32> to vector<1x8x32xf32>
    tpu.vector_store %arg8[%c0_18, %c0_19, %c0_20], %44 {strides = array<i32>} : memref<1x8x32xf32, #tpu.memory_space<vmem>>, vector<1x8x32xf32>,
    %45 = vector.extract_strided_slice %36 {offsets = [0, 64], sizes = [8, 32], strides = [1, 1]} : vector<8x96xf32> to vector<8x32xf32>
    %c0_21 = arith.constant 0 : index
    %c0_22 = arith.constant 0 : index
    %c0_23 = arith.constant 0 : index
    %46 = vector.load %arg9[%c0_21, %c0_22, %c0_23] : memref<1x8x32xf32, #tpu.memory_space<vmem>>, vector<1x8x32xf32>
    %47 = vector.shape_cast %46 : vector<1x8x32xf32> to vector<8x32xf32>
    %48 = vector.shape_cast %45 : vector<8x32xf32> to vector<1x8x32xf32>
    tpu.vector_store %arg9[%c0_21, %c0_22, %c0_23], %48 {strides = array<i32>} : memref<1x8x32xf32, #tpu.memory_space<vmem>>, vector<1x8x32xf32>,
    return
  }
  func.func @transform_0(%arg0: i32, %arg1: i32) -> (i32, i32, i32) {
    %c0_i32 = arith.constant 0 : i32
    %c0_i32_0 = arith.constant 0 : i32
    return %arg0, %arg1, %c0_i32 : i32, i32, i32
  }
  func.func @transform_1(%arg0: i32, %arg1: i32) -> (i32, i32) {
    %c0_i32 = arith.constant 0 : i32
    %c0_i32_0 = arith.constant 0 : i32
    %c0_i32_1 = arith.constant 0 : i32
    return %c0_i32, %c0_i32_0 : i32, i32
  }
  func.func @transform_2(%arg0: i32, %arg1: i32) -> (i32, i32) {
    %c0_i32 = arith.constant 0 : i32
    %c0_i32_0 = arith.constant 0 : i32
    %c0_i32_1 = arith.constant 0 : i32
    return %c0_i32, %c0_i32_0 : i32, i32
  }
  func.func @transform_3(%arg0: i32, %arg1: i32) -> (i32, i32) {
    %c0_i32 = arith.constant 0 : i32
    %c0_i32_0 = arith.constant 0 : i32
    %c0_i32_1 = arith.constant 0 : i32
    return %c0_i32, %c0_i32_0 : i32, i32
  }
  func.func @transform_4(%arg0: i32, %arg1: i32) -> (i32, i32) {
    %c0_i32 = arith.constant 0 : i32
    %c0_i32_0 = arith.constant 0 : i32
    %c0_i32_1 = arith.constant 0 : i32
    return %c0_i32, %c0_i32_0 : i32, i32
  }
  func.func @transform_5(%arg0: i32, %arg1: i32) -> (i32, i32, i32) {
    %c0_i32 = arith.constant 0 : i32
    %c0_i32_0 = arith.constant 0 : i32
    return %arg0, %arg1, %c0_i32 : i32, i32, i32
  }
  func.func @transform_6(%arg0: i32, %arg1: i32) -> (i32, i32, i32) {
    %c0_i32 = arith.constant 0 : i32
    %c0_i32_0 = arith.constant 0 : i32
    return %arg0, %arg1, %c0_i32 : i32, i32, i32
  }
  func.func @transform_7(%arg0: i32, %arg1: i32) -> (i32, i32, i32) {
    %c0_i32 = arith.constant 0 : i32
    %c0_i32_0 = arith.constant 0 : i32
    return %arg0, %arg1, %c0_i32 : i32, i32, i32
  }
}

module attributes {stable_mosaic.version = 11 : i64} {
  func.func @fc_kernel(%arg0: i32, %arg1: i32, %arg2: i32, %arg3: memref<1x8x32xf32, #tpu.memory_space<vmem>>, %arg4: memref<32x64xf32, #tpu.memory_space<vmem>>, %arg5: memref<1x64xf32, #tpu.memory_space<vmem>>, %arg6: memref<1x8x64xf32, #tpu.memory_space<vmem>>) attributes {dimension_semantics = [#tpu.dimension_semantics<parallel>, #tpu.dimension_semantics<parallel>, #tpu.dimension_semantics<parallel>], iteration_bounds = array<i64: 1, 2, 1>, scalar_prefetch = 0 : i64, scratch_operands = 0 : i64, tpu.core_type = #tpu.core_type<tc>, window_params = [{transform_indices = @transform_0, window_bounds = array<i64: 1, 8, 32>}, {transform_indices = @transform_1, window_bounds = array<i64: 32, 64>}, {transform_indices = @transform_2, window_bounds = array<i64: 1, 64>}, {transform_indices = @transform_3, window_bounds = array<i64: 1, 8, 64>}]} {
    %c0 = arith.constant 0 : index
    %c0_0 = arith.constant 0 : index
    %c0_1 = arith.constant 0 : index
    %0 = vector.load %arg3[%c0, %c0_0, %c0_1] : memref<1x8x32xf32, #tpu.memory_space<vmem>>, vector<1x8x32xf32>
    %1 = vector.shape_cast %0 : vector<1x8x32xf32> to vector<8x32xf32>
    %c0_2 = arith.constant 0 : index
    %c0_3 = arith.constant 0 : index
    %2 = vector.load %arg4[%c0_2, %c0_3] : memref<32x64xf32, #tpu.memory_space<vmem>>, vector<32x64xf32>
    %cst = arith.constant dense<0.000000e+00> : vector<8x64xf32>
    %3 = tpu.matmul %1, %2, %cst {dimension_numbers = #tpu.dot_dimension_numbers<[1], [0], [0], [1], [0, 0, 1, 1], [], []>} : vector<8x32xf32>, vector<32x64xf32>, vector<8x64xf32> -> vector<8x64xf32>
    %c0_4 = arith.constant 0 : index
    %c0_5 = arith.constant 0 : index
    %4 = vector.load %arg5[%c0_4, %c0_5] : memref<1x64xf32, #tpu.memory_space<vmem>>, vector<1x64xf32>
    %5 = vector.shape_cast %4 : vector<1x64xf32> to vector<64xf32>
    %6 = vector.shape_cast %5 : vector<64xf32> to vector<1x64xf32>
    %7 = vector.broadcast %6 : vector<1x64xf32> to vector<8x64xf32>
    %8 = arith.addf %3, %7 : vector<8x64xf32>
    %c0_6 = arith.constant 0 : index
    %c0_7 = arith.constant 0 : index
    %c0_8 = arith.constant 0 : index
    %9 = vector.load %arg6[%c0_6, %c0_7, %c0_8] : memref<1x8x64xf32, #tpu.memory_space<vmem>>, vector<1x8x64xf32>
    %10 = vector.shape_cast %9 : vector<1x8x64xf32> to vector<8x64xf32>
    %11 = vector.shape_cast %8 : vector<8x64xf32> to vector<1x8x64xf32>
    tpu.vector_store %arg6[%c0_6, %c0_7, %c0_8], %11 {strides = array<i32>} : memref<1x8x64xf32, #tpu.memory_space<vmem>>, vector<1x8x64xf32>,
    return
  }
  func.func @transform_0(%arg0: i32, %arg1: i32, %arg2: i32) -> (i32, i32, i32) {
    %c0_i32 = arith.constant 0 : i32
    %c0_i32_0 = arith.constant 0 : i32
    return %arg1, %arg2, %c0_i32 : i32, i32, i32
  }
  func.func @transform_1(%arg0: i32, %arg1: i32, %arg2: i32) -> (i32, i32) {
    %c0_i32 = arith.constant 0 : i32
    %c0_i32_0 = arith.constant 0 : i32
    return %c0_i32, %arg0 : i32, i32
  }
  func.func @transform_2(%arg0: i32, %arg1: i32, %arg2: i32) -> (i32, i32) {
    %c0_i32 = arith.constant 0 : i32
    %c0_i32_0 = arith.constant 0 : i32
    return %c0_i32, %arg0 : i32, i32
  }
  func.func @transform_3(%arg0: i32, %arg1: i32, %arg2: i32) -> (i32, i32, i32) {
    %c0_i32 = arith.constant 0 : i32
    return %arg1, %arg2, %arg0 : i32, i32, i32
  }
}

module attributes {stable_mosaic.version = 11 : i64} {
  func.func @proj_ffn_kernel(%arg0: i32, %arg1: i32, %arg2: memref<1x8x32xf32, #tpu.memory_space<vmem>>, %arg3: memref<1x8x32xf32, #tpu.memory_space<vmem>>, %arg4: memref<32x32xf32, #tpu.memory_space<vmem>>, %arg5: memref<1x32xf32, #tpu.memory_space<vmem>>, %arg6: memref<1x32xf32, #tpu.memory_space<vmem>>, %arg7: memref<1x32xf32, #tpu.memory_space<vmem>>, %arg8: memref<32x64xf32, #tpu.memory_space<vmem>>, %arg9: memref<1x64xf32, #tpu.memory_space<vmem>>, %arg10: memref<64x32xf32, #tpu.memory_space<vmem>>, %arg11: memref<1x32xf32, #tpu.memory_space<vmem>>, %arg12: memref<1x8x32xf32, #tpu.memory_space<vmem>>) attributes {dimension_semantics = [#tpu.dimension_semantics<parallel>, #tpu.dimension_semantics<parallel>], iteration_bounds = array<i64: 2, 1>, scalar_prefetch = 0 : i64, scratch_operands = 0 : i64, tpu.core_type = #tpu.core_type<tc>, window_params = [{transform_indices = @transform_0, window_bounds = array<i64: 1, 8, 32>}, {transform_indices = @transform_1, window_bounds = array<i64: 1, 8, 32>}, {pipeline_mode = #tpu.pipeline_mode<synchronous>, transform_indices = @transform_2, window_bounds = array<i64: 32, 32>}, {pipeline_mode = #tpu.pipeline_mode<synchronous>, transform_indices = @transform_3, window_bounds = array<i64: 1, 32>}, {pipeline_mode = #tpu.pipeline_mode<synchronous>, transform_indices = @transform_4, window_bounds = array<i64: 1, 32>}, {pipeline_mode = #tpu.pipeline_mode<synchronous>, transform_indices = @transform_5, window_bounds = array<i64: 1, 32>}, {pipeline_mode = #tpu.pipeline_mode<synchronous>, transform_indices = @transform_6, window_bounds = array<i64: 32, 64>}, {pipeline_mode = #tpu.pipeline_mode<synchronous>, transform_indices = @transform_7, window_bounds = array<i64: 1, 64>}, {pipeline_mode = #tpu.pipeline_mode<synchronous>, transform_indices = @transform_8, window_bounds = array<i64: 64, 32>}, {pipeline_mode = #tpu.pipeline_mode<synchronous>, transform_indices = @transform_9, window_bounds = array<i64: 1, 32>}, {transform_indices = @transform_10, window_bounds = array<i64: 1, 8, 32>}]} {
    %c0 = arith.constant 0 : index
    %c0_0 = arith.constant 0 : index
    %c0_1 = arith.constant 0 : index
    %0 = vector.load %arg2[%c0, %c0_0, %c0_1] : memref<1x8x32xf32, #tpu.memory_space<vmem>>, vector<1x8x32xf32>
    %1 = vector.shape_cast %0 : vector<1x8x32xf32> to vector<8x32xf32>
    %c0_2 = arith.constant 0 : index
    %c0_3 = arith.constant 0 : index
    %c0_4 = arith.constant 0 : index
    %2 = vector.load %arg3[%c0_2, %c0_3, %c0_4] : memref<1x8x32xf32, #tpu.memory_space<vmem>>, vector<1x8x32xf32>
    %3 = vector.shape_cast %2 : vector<1x8x32xf32> to vector<8x32xf32>
    %c0_5 = arith.constant 0 : index
    %c0_6 = arith.constant 0 : index
    %4 = vector.load %arg4[%c0_5, %c0_6] : memref<32x32xf32, #tpu.memory_space<vmem>>, vector<32x32xf32>
    %cst = arith.constant dense<0.000000e+00> : vector<8x32xf32>
    %5 = tpu.matmul %3, %4, %cst {dimension_numbers = #tpu.dot_dimension_numbers<[1], [0], [0], [1], [0, 0, 1, 1], [], []>} : vector<8x32xf32>, vector<32x32xf32>, vector<8x32xf32> -> vector<8x32xf32>
    %6 = arith.addf %1, %5 : vector<8x32xf32>
    %c0_7 = arith.constant 0 : index
    %c0_8 = arith.constant 0 : index
    %7 = vector.load %arg5[%c0_7, %c0_8] : memref<1x32xf32, #tpu.memory_space<vmem>>, vector<1x32xf32>
    %8 = vector.shape_cast %7 : vector<1x32xf32> to vector<32xf32>
    %9 = vector.shape_cast %8 : vector<32xf32> to vector<1x32xf32>
    %10 = vector.broadcast %9 : vector<1x32xf32> to vector<8x32xf32>
    %11 = arith.addf %6, %10 : vector<8x32xf32>
    %c0_9 = arith.constant 0 : index
    %c0_10 = arith.constant 0 : index
    %12 = vector.load %arg6[%c0_9, %c0_10] : memref<1x32xf32, #tpu.memory_space<vmem>>, vector<1x32xf32>
    %13 = vector.shape_cast %12 : vector<1x32xf32> to vector<32xf32>
    %c0_11 = arith.constant 0 : index
    %c0_12 = arith.constant 0 : index
    %14 = vector.load %arg7[%c0_11, %c0_12] : memref<1x32xf32, #tpu.memory_space<vmem>>, vector<1x32xf32>
    %15 = vector.shape_cast %14 : vector<1x32xf32> to vector<32xf32>
    %cst_13 = arith.constant dense<0.000000e+00> : vector<8xf32>
    %16 = vector.multi_reduction <add>, %11, %cst_13 [1] : vector<8x32xf32> to vector<8xf32>
    %17 = vector.shape_cast %16 : vector<8xf32> to vector<8x1xf32>
    %cst_14 = arith.constant 3.200000e+01 : f32
    %18 = vector.broadcast %cst_14 : f32 to vector<8x1xf32>
    %19 = arith.divf %17, %18 : vector<8x1xf32>
    %20 = vector.broadcast %19 : vector<8x1xf32> to vector<8x32xf32>
    %21 = arith.subf %11, %20 : vector<8x32xf32>
    %22 = arith.mulf %21, %21 : vector<8x32xf32>
    %cst_15 = arith.constant dense<0.000000e+00> : vector<8xf32>
    %23 = vector.multi_reduction <add>, %22, %cst_15 [1] : vector<8x32xf32> to vector<8xf32>
    %24 = vector.shape_cast %23 : vector<8xf32> to vector<8x1xf32>
    %cst_16 = arith.constant 3.200000e+01 : f32
    %25 = vector.broadcast %cst_16 : f32 to vector<8x1xf32>
    %26 = arith.divf %24, %25 : vector<8x1xf32>
    %27 = vector.broadcast %19 : vector<8x1xf32> to vector<8x32xf32>
    %28 = arith.subf %11, %27 : vector<8x32xf32>
    %cst_17 = arith.constant 9.99999974E-6 : f32
    %29 = vector.broadcast %cst_17 : f32 to vector<8x1xf32>
    %30 = arith.addf %26, %29 : vector<8x1xf32>
    %31 = math.rsqrt %30 : vector<8x1xf32>
    %32 = vector.broadcast %31 : vector<8x1xf32> to vector<8x32xf32>
    %33 = arith.mulf %28, %32 : vector<8x32xf32>
    %34 = vector.shape_cast %13 : vector<32xf32> to vector<1x32xf32>
    %35 = vector.broadcast %34 : vector<1x32xf32> to vector<8x32xf32>
    %36 = arith.mulf %33, %35 : vector<8x32xf32>
    %37 = vector.shape_cast %15 : vector<32xf32> to vector<1x32xf32>
    %38 = vector.broadcast %37 : vector<1x32xf32> to vector<8x32xf32>
    %39 = arith.addf %36, %38 : vector<8x32xf32>
    %c0_18 = arith.constant 0 : index
    %c0_19 = arith.constant 0 : index
    %40 = vector.load %arg8[%c0_18, %c0_19] : memref<32x64xf32, #tpu.memory_space<vmem>>, vector<32x64xf32>
    %cst_20 = arith.constant dense<0.000000e+00> : vector<8x64xf32>
    %41 = tpu.matmul %39, %40, %cst_20 {dimension_numbers = #tpu.dot_dimension_numbers<[1], [0], [0], [1], [0, 0, 1, 1], [], []>} : vector<8x32xf32>, vector<32x64xf32>, vector<8x64xf32> -> vector<8x64xf32>
    %c0_21 = arith.constant 0 : index
    %c0_22 = arith.constant 0 : index
    %42 = vector.load %arg9[%c0_21, %c0_22] : memref<1x64xf32, #tpu.memory_space<vmem>>, vector<1x64xf32>
    %43 = vector.shape_cast %42 : vector<1x64xf32> to vector<64xf32>
    %44 = vector.shape_cast %43 : vector<64xf32> to vector<1x64xf32>
    %45 = vector.broadcast %44 : vector<1x64xf32> to vector<8x64xf32>
    %46 = arith.addf %41, %45 : vector<8x64xf32>
    %cst_23 = arith.constant 0.000000e+00 : f32
    %47 = vector.broadcast %cst_23 : f32 to vector<8x64xf32>
    %48 = arith.maximumf %46, %47 : vector<8x64xf32>
    %c0_24 = arith.constant 0 : index
    %c0_25 = arith.constant 0 : index
    %49 = vector.load %arg10[%c0_24, %c0_25] : memref<64x32xf32, #tpu.memory_space<vmem>>, vector<64x32xf32>
    %cst_26 = arith.constant dense<0.000000e+00> : vector<8x32xf32>
    %50 = tpu.matmul %48, %49, %cst_26 {dimension_numbers = #tpu.dot_dimension_numbers<[1], [0], [0], [1], [0, 0, 1, 1], [], []>} : vector<8x64xf32>, vector<64x32xf32>, vector<8x32xf32> -> vector<8x32xf32>
    %c0_27 = arith.constant 0 : index
    %c0_28 = arith.constant 0 : index
    %51 = vector.load %arg11[%c0_27, %c0_28] : memref<1x32xf32, #tpu.memory_space<vmem>>, vector<1x32xf32>
    %52 = vector.shape_cast %51 : vector<1x32xf32> to vector<32xf32>
    %53 = vector.shape_cast %52 : vector<32xf32> to vector<1x32xf32>
    %54 = vector.broadcast %53 : vector<1x32xf32> to vector<8x32xf32>
    %55 = arith.addf %50, %54 : vector<8x32xf32>
    %56 = arith.addf %11, %55 : vector<8x32xf32>
    %c0_29 = arith.constant 0 : index
    %c0_30 = arith.constant 0 : index
    %c0_31 = arith.constant 0 : index
    %57 = vector.load %arg12[%c0_29, %c0_30, %c0_31] : memref<1x8x32xf32, #tpu.memory_space<vmem>>, vector<1x8x32xf32>
    %58 = vector.shape_cast %57 : vector<1x8x32xf32> to vector<8x32xf32>
    %59 = vector.shape_cast %56 : vector<8x32xf32> to vector<1x8x32xf32>
    tpu.vector_store %arg12[%c0_29, %c0_30, %c0_31], %59 {strides = array<i32>} : memref<1x8x32xf32, #tpu.memory_space<vmem>>, vector<1x8x32xf32>,
    return
  }
  func.func @transform_0(%arg0: i32, %arg1: i32) -> (i32, i32, i32) {
    %c0_i32 = arith.constant 0 : i32
    %c0_i32_0 = arith.constant 0 : i32
    return %arg0, %arg1, %c0_i32 : i32, i32, i32
  }
  func.func @transform_1(%arg0: i32, %arg1: i32) -> (i32, i32, i32) {
    %c0_i32 = arith.constant 0 : i32
    %c0_i32_0 = arith.constant 0 : i32
    return %arg0, %arg1, %c0_i32 : i32, i32, i32
  }
  func.func @transform_2(%arg0: i32, %arg1: i32) -> (i32, i32) {
    %c0_i32 = arith.constant 0 : i32
    %c0_i32_0 = arith.constant 0 : i32
    %c0_i32_1 = arith.constant 0 : i32
    return %c0_i32, %c0_i32_0 : i32, i32
  }
  func.func @transform_3(%arg0: i32, %arg1: i32) -> (i32, i32) {
    %c0_i32 = arith.constant 0 : i32
    %c0_i32_0 = arith.constant 0 : i32
    %c0_i32_1 = arith.constant 0 : i32
    return %c0_i32, %c0_i32_0 : i32, i32
  }
  func.func @transform_4(%arg0: i32, %arg1: i32) -> (i32, i32) {
    %c0_i32 = arith.constant 0 : i32
    %c0_i32_0 = arith.constant 0 : i32
    %c0_i32_1 = arith.constant 0 : i32
    return %c0_i32, %c0_i32_0 : i32, i32
  }
  func.func @transform_5(%arg0: i32, %arg1: i32) -> (i32, i32) {
    %c0_i32 = arith.constant 0 : i32
    %c0_i32_0 = arith.constant 0 : i32
    %c0_i32_1 = arith.constant 0 : i32
    return %c0_i32, %c0_i32_0 : i32, i32
  }
  func.func @transform_6(%arg0: i32, %arg1: i32) -> (i32, i32) {
    %c0_i32 = arith.constant 0 : i32
    %c0_i32_0 = arith.constant 0 : i32
    %c0_i32_1 = arith.constant 0 : i32
    return %c0_i32, %c0_i32_0 : i32, i32
  }
  func.func @transform_7(%arg0: i32, %arg1: i32) -> (i32, i32) {
    %c0_i32 = arith.constant 0 : i32
    %c0_i32_0 = arith.constant 0 : i32
    %c0_i32_1 = arith.constant 0 : i32
    return %c0_i32, %c0_i32_0 : i32, i32
  }
  func.func @transform_8(%arg0: i32, %arg1: i32) -> (i32, i32) {
    %c0_i32 = arith.constant 0 : i32
    %c0_i32_0 = arith.constant 0 : i32
    %c0_i32_1 = arith.constant 0 : i32
    return %c0_i32, %c0_i32_0 : i32, i32
  }
  func.func @transform_9(%arg0: i32, %arg1: i32) -> (i32, i32) {
    %c0_i32 = arith.constant 0 : i32
    %c0_i32_0 = arith.constant 0 : i32
    %c0_i32_1 = arith.constant 0 : i32
    return %c0_i32, %c0_i32_0 : i32, i32
  }
  func.func @transform_10(%arg0: i32, %arg1: i32) -> (i32, i32, i32) {
    %c0_i32 = arith.constant 0 : i32
    %c0_i32_0 = arith.constant 0 : i32
    return %arg0, %arg1, %c0_i32 : i32, i32, i32
  }
}

module attributes {stable_mosaic.version = 11 : i64} {
  func.func @flash_attn_kernel(%arg0: i32, %arg1: i32, %arg2: i32, %arg3: i32, %arg4: memref<1x8x32xf32, #tpu.memory_space<vmem>>, %arg5: memref<1x8x32xf32, #tpu.memory_space<vmem>>, %arg6: memref<1x8x32xf32, #tpu.memory_space<vmem>>, %arg7: memref<1x8x32xf32, #tpu.memory_space<vmem>>, %arg8: memref<4x8x1xf32, #tpu.memory_space<vmem>>, %arg9: memref<4x8x1xf32, #tpu.memory_space<vmem>>, %arg10: memref<4x8x8xf32, #tpu.memory_space<vmem>>) attributes {dimension_semantics = [#tpu.dimension_semantics<parallel>, #tpu.dimension_semantics<parallel>, #tpu.dimension_semantics<parallel>, #tpu.dimension_semantics<arbitrary>], iteration_bounds = array<i64: 2, 1, 1, 1>, scalar_prefetch = 0 : i64, scratch_operands = 3 : i64, tpu.core_type = #tpu.core_type<tc>, window_params = [{transform_indices = @transform_0, window_bounds = array<i64: 1, 8, 32>}, {transform_indices = @transform_1, window_bounds = array<i64: 1, 8, 32>}, {transform_indices = @transform_2, window_bounds = array<i64: 1, 8, 32>}, {transform_indices = @transform_3, window_bounds = array<i64: 1, 8, 32>}]} {
    %c0_i32 = arith.constant 0 : i32
    %0 = arith.cmpi eq, %arg3, %c0_i32 : i32
    %1 = arith.extui %0 : i1 to i32
    %c0_i32_0 = arith.constant 0 : i32
    %2 = arith.cmpi ne, %1, %c0_i32_0 : i32
    scf.if %2 {
      %cst = arith.constant -1.000000e+30 : f32
      %9 = vector.broadcast %cst : f32 to vector<4x8x1xf32>
      %c0 = arith.constant 0 : index
      %c0_3 = arith.constant 0 : index
      %c0_4 = arith.constant 0 : index
      %10 = vector.load %arg8[%c0, %c0_3, %c0_4] : memref<4x8x1xf32, #tpu.memory_space<vmem>>, vector<4x8x1xf32>
      tpu.vector_store %arg8[%c0, %c0_3, %c0_4], %9 {strides = array<i32>} : memref<4x8x1xf32, #tpu.memory_space<vmem>>, vector<4x8x1xf32>,
      %cst_5 = arith.constant 0.000000e+00 : f32
      %11 = vector.broadcast %cst_5 : f32 to vector<4x8x1xf32>
      %c0_6 = arith.constant 0 : index
      %c0_7 = arith.constant 0 : index
      %c0_8 = arith.constant 0 : index
      %12 = vector.load %arg9[%c0_6, %c0_7, %c0_8] : memref<4x8x1xf32, #tpu.memory_space<vmem>>, vector<4x8x1xf32>
      tpu.vector_store %arg9[%c0_6, %c0_7, %c0_8], %11 {strides = array<i32>} : memref<4x8x1xf32, #tpu.memory_space<vmem>>, vector<4x8x1xf32>,
      %cst_9 = arith.constant 0.000000e+00 : f32
      %13 = vector.broadcast %cst_9 : f32 to vector<4x8x8xf32>
      %c0_10 = arith.constant 0 : index
      %c0_11 = arith.constant 0 : index
      %c0_12 = arith.constant 0 : index
      %14 = vector.load %arg10[%c0_10, %c0_11, %c0_12] : memref<4x8x8xf32, #tpu.memory_space<vmem>>, vector<4x8x8xf32>
      tpu.vector_store %arg10[%c0_10, %c0_11, %c0_12], %13 {strides = array<i32>} : memref<4x8x8xf32, #tpu.memory_space<vmem>>, vector<4x8x8xf32>,
    } else {
    }
    %3 = arith.cmpi slt, %arg3, %arg2 : i32
    %4 = arith.extui %3 : i1 to i32
    %c0_i32_1 = arith.constant 0 : i32
    %5 = arith.cmpi ne, %4, %c0_i32_1 : i32
    scf.if %5 {
      %c0 = arith.constant 0 : index
      %c0_3 = arith.constant 0 : index
      %c0_4 = arith.constant 0 : index
      %9 = vector.load %arg4[%c0, %c0_3, %c0_4] : memref<1x8x32xf32, #tpu.memory_space<vmem>>, vector<1x8x32xf32>
      %10 = vector.shape_cast %9 : vector<1x8x32xf32> to vector<8x32xf32>
      %c0_5 = arith.constant 0 : index
      %c0_6 = arith.constant 0 : index
      %c0_7 = arith.constant 0 : index
      %11 = vector.load %arg5[%c0_5, %c0_6, %c0_7] : memref<1x8x32xf32, #tpu.memory_space<vmem>>, vector<1x8x32xf32>
      %12 = vector.shape_cast %11 : vector<1x8x32xf32> to vector<8x32xf32>
      %c0_8 = arith.constant 0 : index
      %c0_9 = arith.constant 0 : index
      %c0_10 = arith.constant 0 : index
      %13 = vector.load %arg6[%c0_8, %c0_9, %c0_10] : memref<1x8x32xf32, #tpu.memory_space<vmem>>, vector<1x8x32xf32>
      %14 = vector.shape_cast %13 : vector<1x8x32xf32> to vector<8x32xf32>
      %15 = vector.extract_strided_slice %10 {offsets = [0, 0], sizes = [8, 8], strides = [1, 1]} : vector<8x32xf32> to vector<8x8xf32>
      %16 = vector.extract_strided_slice %12 {offsets = [0, 0], sizes = [8, 8], strides = [1, 1]} : vector<8x32xf32> to vector<8x8xf32>
      %17 = vector.extract_strided_slice %14 {offsets = [0, 0], sizes = [8, 8], strides = [1, 1]} : vector<8x32xf32> to vector<8x8xf32>
      %cst = arith.constant dense<0.000000e+00> : vector<8x8xf32>
      %18 = tpu.matmul %15, %16, %cst {dimension_numbers = #tpu.dot_dimension_numbers<[1], [1], [0], [0], [0, 0, 1, 0], [], []>} : vector<8x8xf32>, vector<8x8xf32>, vector<8x8xf32> -> vector<8x8xf32>
      %c0_11 = arith.constant 0 : index
      %c0_12 = arith.constant 0 : index
      %c0_13 = arith.constant 0 : index
      %19 = vector.load %arg8[%c0_11, %c0_12, %c0_13] : memref<4x8x1xf32, #tpu.memory_space<vmem>>, vector<1x8x1xf32>
      %20 = vector.shape_cast %19 : vector<1x8x1xf32> to vector<8x1xf32>
      %cst_14 = arith.constant dense<0xFF800000> : vector<8xf32>
      %21 = vector.multi_reduction <maximumf>, %18, %cst_14 [1] : vector<8x8xf32> to vector<8xf32>
      %22 = vector.shape_cast %21 : vector<8xf32> to vector<8x1xf32>
      %23 = arith.maximumf %20, %22 : vector<8x1xf32>
      %24 = arith.subf %20, %23 : vector<8x1xf32>
      %25 = math.exp %24 : vector<8x1xf32>
      %26 = vector.broadcast %23 : vector<8x1xf32> to vector<8x8xf32>
      %27 = arith.subf %18, %26 : vector<8x8xf32>
      %28 = math.exp %27 : vector<8x8xf32>
      %c0_15 = arith.constant 0 : index
      %c0_16 = arith.constant 0 : index
      %c0_17 = arith.constant 0 : index
      %29 = vector.load %arg9[%c0_15, %c0_16, %c0_17] : memref<4x8x1xf32, #tpu.memory_space<vmem>>, vector<1x8x1xf32>
      %30 = vector.shape_cast %29 : vector<1x8x1xf32> to vector<8x1xf32>
      %31 = arith.mulf %25, %30 : vector<8x1xf32>
      %cst_18 = arith.constant dense<0.000000e+00> : vector<8xf32>
      %32 = vector.multi_reduction <add>, %28, %cst_18 [1] : vector<8x8xf32> to vector<8xf32>
      %33 = vector.shape_cast %32 : vector<8xf32> to vector<8x1xf32>
      %34 = arith.addf %31, %33 : vector<8x1xf32>
      %c0_19 = arith.constant 0 : index
      %c0_20 = arith.constant 0 : index
      %c0_21 = arith.constant 0 : index
      %35 = vector.load %arg9[%c0_19, %c0_20, %c0_21] : memref<4x8x1xf32, #tpu.memory_space<vmem>>, vector<1x8x1xf32>
      %36 = vector.shape_cast %35 : vector<1x8x1xf32> to vector<8x1xf32>
      %37 = vector.shape_cast %34 : vector<8x1xf32> to vector<1x8x1xf32>
      tpu.vector_store %arg9[%c0_19, %c0_20, %c0_21], %37 {strides = array<i32>} : memref<4x8x1xf32, #tpu.memory_space<vmem>>, vector<1x8x1xf32>,
      %c0_22 = arith.constant 0 : index
      %c0_23 = arith.constant 0 : index
      %c0_24 = arith.constant 0 : index
      %38 = vector.load %arg10[%c0_22, %c0_23, %c0_24] : memref<4x8x8xf32, #tpu.memory_space<vmem>>, vector<1x8x8xf32>
      %39 = vector.shape_cast %38 : vector<1x8x8xf32> to vector<8x8xf32>
      %40 = vector.broadcast %25 : vector<8x1xf32> to vector<8x8xf32>
      %41 = arith.mulf %40, %39 : vector<8x8xf32>
      %cst_25 = arith.constant dense<0.000000e+00> : vector<8x8xf32>
      %42 = tpu.matmul %28, %17, %cst_25 {dimension_numbers = #tpu.dot_dimension_numbers<[1], [0], [0], [1], [0, 0, 1, 1], [], []>} : vector<8x8xf32>, vector<8x8xf32>, vector<8x8xf32> -> vector<8x8xf32>
      %43 = arith.addf %41, %42 : vector<8x8xf32>
      %c0_26 = arith.constant 0 : index
      %c0_27 = arith.constant 0 : index
      %c0_28 = arith.constant 0 : index
      %44 = vector.load %arg10[%c0_26, %c0_27, %c0_28] : memref<4x8x8xf32, #tpu.memory_space<vmem>>, vector<1x8x8xf32>
      %45 = vector.shape_cast %44 : vector<1x8x8xf32> to vector<8x8xf32>
      %46 = vector.shape_cast %43 : vector<8x8xf32> to vector<1x8x8xf32>
      tpu.vector_store %arg10[%c0_26, %c0_27, %c0_28], %46 {strides = array<i32>} : memref<4x8x8xf32, #tpu.memory_space<vmem>>, vector<1x8x8xf32>,
      %c0_29 = arith.constant 0 : index
      %c0_30 = arith.constant 0 : index
      %c0_31 = arith.constant 0 : index
      %47 = vector.load %arg8[%c0_29, %c0_30, %c0_31] : memref<4x8x1xf32, #tpu.memory_space<vmem>>, vector<1x8x1xf32>
      %48 = vector.shape_cast %47 : vector<1x8x1xf32> to vector<8x1xf32>
      %49 = vector.shape_cast %23 : vector<8x1xf32> to vector<1x8x1xf32>
      tpu.vector_store %arg8[%c0_29, %c0_30, %c0_31], %49 {strides = array<i32>} : memref<4x8x1xf32, #tpu.memory_space<vmem>>, vector<1x8x1xf32>,
      %50 = vector.extract_strided_slice %10 {offsets = [0, 8], sizes = [8, 8], strides = [1, 1]} : vector<8x32xf32> to vector<8x8xf32>
      %51 = vector.extract_strided_slice %12 {offsets = [0, 8], sizes = [8, 8], strides = [1, 1]} : vector<8x32xf32> to vector<8x8xf32>
      %52 = vector.extract_strided_slice %14 {offsets = [0, 8], sizes = [8, 8], strides = [1, 1]} : vector<8x32xf32> to vector<8x8xf32>
      %cst_32 = arith.constant dense<0.000000e+00> : vector<8x8xf32>
      %53 = tpu.matmul %50, %51, %cst_32 {dimension_numbers = #tpu.dot_dimension_numbers<[1], [1], [0], [0], [0, 0, 1, 0], [], []>} : vector<8x8xf32>, vector<8x8xf32>, vector<8x8xf32> -> vector<8x8xf32>
      %c1 = arith.constant 1 : index
      %c0_33 = arith.constant 0 : index
      %c0_34 = arith.constant 0 : index
      %54 = vector.load %arg8[%c1, %c0_33, %c0_34] : memref<4x8x1xf32, #tpu.memory_space<vmem>>, vector<1x8x1xf32>
      %55 = vector.shape_cast %54 : vector<1x8x1xf32> to vector<8x1xf32>
      %cst_35 = arith.constant dense<0xFF800000> : vector<8xf32>
      %56 = vector.multi_reduction <maximumf>, %53, %cst_35 [1] : vector<8x8xf32> to vector<8xf32>
      %57 = vector.shape_cast %56 : vector<8xf32> to vector<8x1xf32>
      %58 = arith.maximumf %55, %57 : vector<8x1xf32>
      %59 = arith.subf %55, %58 : vector<8x1xf32>
      %60 = math.exp %59 : vector<8x1xf32>
      %61 = vector.broadcast %58 : vector<8x1xf32> to vector<8x8xf32>
      %62 = arith.subf %53, %61 : vector<8x8xf32>
      %63 = math.exp %62 : vector<8x8xf32>
      %c1_36 = arith.constant 1 : index
      %c0_37 = arith.constant 0 : index
      %c0_38 = arith.constant 0 : index
      %64 = vector.load %arg9[%c1_36, %c0_37, %c0_38] : memref<4x8x1xf32, #tpu.memory_space<vmem>>, vector<1x8x1xf32>
      %65 = vector.shape_cast %64 : vector<1x8x1xf32> to vector<8x1xf32>
      %66 = arith.mulf %60, %65 : vector<8x1xf32>
      %cst_39 = arith.constant dense<0.000000e+00> : vector<8xf32>
      %67 = vector.multi_reduction <add>, %63, %cst_39 [1] : vector<8x8xf32> to vector<8xf32>
      %68 = vector.shape_cast %67 : vector<8xf32> to vector<8x1xf32>
      %69 = arith.addf %66, %68 : vector<8x1xf32>
      %c1_40 = arith.constant 1 : index
      %c0_41 = arith.constant 0 : index
      %c0_42 = arith.constant 0 : index
      %70 = vector.load %arg9[%c1_40, %c0_41, %c0_42] : memref<4x8x1xf32, #tpu.memory_space<vmem>>, vector<1x8x1xf32>
      %71 = vector.shape_cast %70 : vector<1x8x1xf32> to vector<8x1xf32>
      %72 = vector.shape_cast %69 : vector<8x1xf32> to vector<1x8x1xf32>
      tpu.vector_store %arg9[%c1_40, %c0_41, %c0_42], %72 {strides = array<i32>} : memref<4x8x1xf32, #tpu.memory_space<vmem>>, vector<1x8x1xf32>,
      %c1_43 = arith.constant 1 : index
      %c0_44 = arith.constant 0 : index
      %c0_45 = arith.constant 0 : index
      %73 = vector.load %arg10[%c1_43, %c0_44, %c0_45] : memref<4x8x8xf32, #tpu.memory_space<vmem>>, vector<1x8x8xf32>
      %74 = vector.shape_cast %73 : vector<1x8x8xf32> to vector<8x8xf32>
      %75 = vector.broadcast %60 : vector<8x1xf32> to vector<8x8xf32>
      %76 = arith.mulf %75, %74 : vector<8x8xf32>
      %cst_46 = arith.constant dense<0.000000e+00> : vector<8x8xf32>
      %77 = tpu.matmul %63, %52, %cst_46 {dimension_numbers = #tpu.dot_dimension_numbers<[1], [0], [0], [1], [0, 0, 1, 1], [], []>} : vector<8x8xf32>, vector<8x8xf32>, vector<8x8xf32> -> vector<8x8xf32>
      %78 = arith.addf %76, %77 : vector<8x8xf32>
      %c1_47 = arith.constant 1 : index
      %c0_48 = arith.constant 0 : index
      %c0_49 = arith.constant 0 : index
      %79 = vector.load %arg10[%c1_47, %c0_48, %c0_49] : memref<4x8x8xf32, #tpu.memory_space<vmem>>, vector<1x8x8xf32>
      %80 = vector.shape_cast %79 : vector<1x8x8xf32> to vector<8x8xf32>
      %81 = vector.shape_cast %78 : vector<8x8xf32> to vector<1x8x8xf32>
      tpu.vector_store %arg10[%c1_47, %c0_48, %c0_49], %81 {strides = array<i32>} : memref<4x8x8xf32, #tpu.memory_space<vmem>>, vector<1x8x8xf32>,
      %c1_50 = arith.constant 1 : index
      %c0_51 = arith.constant 0 : index
      %c0_52 = arith.constant 0 : index
      %82 = vector.load %arg8[%c1_50, %c0_51, %c0_52] : memref<4x8x1xf32, #tpu.memory_space<vmem>>, vector<1x8x1xf32>
      %83 = vector.shape_cast %82 : vector<1x8x1xf32> to vector<8x1xf32>
      %84 = vector.shape_cast %58 : vector<8x1xf32> to vector<1x8x1xf32>
      tpu.vector_store %arg8[%c1_50, %c0_51, %c0_52], %84 {strides = array<i32>} : memref<4x8x1xf32, #tpu.memory_space<vmem>>, vector<1x8x1xf32>,
      %85 = vector.extract_strided_slice %10 {offsets = [0, 16], sizes = [8, 8], strides = [1, 1]} : vector<8x32xf32> to vector<8x8xf32>
      %86 = vector.extract_strided_slice %12 {offsets = [0, 16], sizes = [8, 8], strides = [1, 1]} : vector<8x32xf32> to vector<8x8xf32>
      %87 = vector.extract_strided_slice %14 {offsets = [0, 16], sizes = [8, 8], strides = [1, 1]} : vector<8x32xf32> to vector<8x8xf32>
      %cst_53 = arith.constant dense<0.000000e+00> : vector<8x8xf32>
      %88 = tpu.matmul %85, %86, %cst_53 {dimension_numbers = #tpu.dot_dimension_numbers<[1], [1], [0], [0], [0, 0, 1, 0], [], []>} : vector<8x8xf32>, vector<8x8xf32>, vector<8x8xf32> -> vector<8x8xf32>
      %c2 = arith.constant 2 : index
      %c0_54 = arith.constant 0 : index
      %c0_55 = arith.constant 0 : index
      %89 = vector.load %arg8[%c2, %c0_54, %c0_55] : memref<4x8x1xf32, #tpu.memory_space<vmem>>, vector<1x8x1xf32>
      %90 = vector.shape_cast %89 : vector<1x8x1xf32> to vector<8x1xf32>
      %cst_56 = arith.constant dense<0xFF800000> : vector<8xf32>
      %91 = vector.multi_reduction <maximumf>, %88, %cst_56 [1] : vector<8x8xf32> to vector<8xf32>
      %92 = vector.shape_cast %91 : vector<8xf32> to vector<8x1xf32>
      %93 = arith.maximumf %90, %92 : vector<8x1xf32>
      %94 = arith.subf %90, %93 : vector<8x1xf32>
      %95 = math.exp %94 : vector<8x1xf32>
      %96 = vector.broadcast %93 : vector<8x1xf32> to vector<8x8xf32>
      %97 = arith.subf %88, %96 : vector<8x8xf32>
      %98 = math.exp %97 : vector<8x8xf32>
      %c2_57 = arith.constant 2 : index
      %c0_58 = arith.constant 0 : index
      %c0_59 = arith.constant 0 : index
      %99 = vector.load %arg9[%c2_57, %c0_58, %c0_59] : memref<4x8x1xf32, #tpu.memory_space<vmem>>, vector<1x8x1xf32>
      %100 = vector.shape_cast %99 : vector<1x8x1xf32> to vector<8x1xf32>
      %101 = arith.mulf %95, %100 : vector<8x1xf32>
      %cst_60 = arith.constant dense<0.000000e+00> : vector<8xf32>
      %102 = vector.multi_reduction <add>, %98, %cst_60 [1] : vector<8x8xf32> to vector<8xf32>
      %103 = vector.shape_cast %102 : vector<8xf32> to vector<8x1xf32>
      %104 = arith.addf %101, %103 : vector<8x1xf32>
      %c2_61 = arith.constant 2 : index
      %c0_62 = arith.constant 0 : index
      %c0_63 = arith.constant 0 : index
      %105 = vector.load %arg9[%c2_61, %c0_62, %c0_63] : memref<4x8x1xf32, #tpu.memory_space<vmem>>, vector<1x8x1xf32>
      %106 = vector.shape_cast %105 : vector<1x8x1xf32> to vector<8x1xf32>
      %107 = vector.shape_cast %104 : vector<8x1xf32> to vector<1x8x1xf32>
      tpu.vector_store %arg9[%c2_61, %c0_62, %c0_63], %107 {strides = array<i32>} : memref<4x8x1xf32, #tpu.memory_space<vmem>>, vector<1x8x1xf32>,
      %c2_64 = arith.constant 2 : index
      %c0_65 = arith.constant 0 : index
      %c0_66 = arith.constant 0 : index
      %108 = vector.load %arg10[%c2_64, %c0_65, %c0_66] : memref<4x8x8xf32, #tpu.memory_space<vmem>>, vector<1x8x8xf32>
      %109 = vector.shape_cast %108 : vector<1x8x8xf32> to vector<8x8xf32>
      %110 = vector.broadcast %95 : vector<8x1xf32> to vector<8x8xf32>
      %111 = arith.mulf %110, %109 : vector<8x8xf32>
      %cst_67 = arith.constant dense<0.000000e+00> : vector<8x8xf32>
      %112 = tpu.matmul %98, %87, %cst_67 {dimension_numbers = #tpu.dot_dimension_numbers<[1], [0], [0], [1], [0, 0, 1, 1], [], []>} : vector<8x8xf32>, vector<8x8xf32>, vector<8x8xf32> -> vector<8x8xf32>
      %113 = arith.addf %111, %112 : vector<8x8xf32>
      %c2_68 = arith.constant 2 : index
      %c0_69 = arith.constant 0 : index
      %c0_70 = arith.constant 0 : index
      %114 = vector.load %arg10[%c2_68, %c0_69, %c0_70] : memref<4x8x8xf32, #tpu.memory_space<vmem>>, vector<1x8x8xf32>
      %115 = vector.shape_cast %114 : vector<1x8x8xf32> to vector<8x8xf32>
      %116 = vector.shape_cast %113 : vector<8x8xf32> to vector<1x8x8xf32>
      tpu.vector_store %arg10[%c2_68, %c0_69, %c0_70], %116 {strides = array<i32>} : memref<4x8x8xf32, #tpu.memory_space<vmem>>, vector<1x8x8xf32>,
      %c2_71 = arith.constant 2 : index
      %c0_72 = arith.constant 0 : index
      %c0_73 = arith.constant 0 : index
      %117 = vector.load %arg8[%c2_71, %c0_72, %c0_73] : memref<4x8x1xf32, #tpu.memory_space<vmem>>, vector<1x8x1xf32>
      %118 = vector.shape_cast %117 : vector<1x8x1xf32> to vector<8x1xf32>
      %119 = vector.shape_cast %93 : vector<8x1xf32> to vector<1x8x1xf32>
      tpu.vector_store %arg8[%c2_71, %c0_72, %c0_73], %119 {strides = array<i32>} : memref<4x8x1xf32, #tpu.memory_space<vmem>>, vector<1x8x1xf32>,
      %120 = vector.extract_strided_slice %10 {offsets = [0, 24], sizes = [8, 8], strides = [1, 1]} : vector<8x32xf32> to vector<8x8xf32>
      %121 = vector.extract_strided_slice %12 {offsets = [0, 24], sizes = [8, 8], strides = [1, 1]} : vector<8x32xf32> to vector<8x8xf32>
      %122 = vector.extract_strided_slice %14 {offsets = [0, 24], sizes = [8, 8], strides = [1, 1]} : vector<8x32xf32> to vector<8x8xf32>
      %cst_74 = arith.constant dense<0.000000e+00> : vector<8x8xf32>
      %123 = tpu.matmul %120, %121, %cst_74 {dimension_numbers = #tpu.dot_dimension_numbers<[1], [1], [0], [0], [0, 0, 1, 0], [], []>} : vector<8x8xf32>, vector<8x8xf32>, vector<8x8xf32> -> vector<8x8xf32>
      %c3 = arith.constant 3 : index
      %c0_75 = arith.constant 0 : index
      %c0_76 = arith.constant 0 : index
      %124 = vector.load %arg8[%c3, %c0_75, %c0_76] : memref<4x8x1xf32, #tpu.memory_space<vmem>>, vector<1x8x1xf32>
      %125 = vector.shape_cast %124 : vector<1x8x1xf32> to vector<8x1xf32>
      %cst_77 = arith.constant dense<0xFF800000> : vector<8xf32>
      %126 = vector.multi_reduction <maximumf>, %123, %cst_77 [1] : vector<8x8xf32> to vector<8xf32>
      %127 = vector.shape_cast %126 : vector<8xf32> to vector<8x1xf32>
      %128 = arith.maximumf %125, %127 : vector<8x1xf32>
      %129 = arith.subf %125, %128 : vector<8x1xf32>
      %130 = math.exp %129 : vector<8x1xf32>
      %131 = vector.broadcast %128 : vector<8x1xf32> to vector<8x8xf32>
      %132 = arith.subf %123, %131 : vector<8x8xf32>
      %133 = math.exp %132 : vector<8x8xf32>
      %c3_78 = arith.constant 3 : index
      %c0_79 = arith.constant 0 : index
      %c0_80 = arith.constant 0 : index
      %134 = vector.load %arg9[%c3_78, %c0_79, %c0_80] : memref<4x8x1xf32, #tpu.memory_space<vmem>>, vector<1x8x1xf32>
      %135 = vector.shape_cast %134 : vector<1x8x1xf32> to vector<8x1xf32>
      %136 = arith.mulf %130, %135 : vector<8x1xf32>
      %cst_81 = arith.constant dense<0.000000e+00> : vector<8xf32>
      %137 = vector.multi_reduction <add>, %133, %cst_81 [1] : vector<8x8xf32> to vector<8xf32>
      %138 = vector.shape_cast %137 : vector<8xf32> to vector<8x1xf32>
      %139 = arith.addf %136, %138 : vector<8x1xf32>
      %c3_82 = arith.constant 3 : index
      %c0_83 = arith.constant 0 : index
      %c0_84 = arith.constant 0 : index
      %140 = vector.load %arg9[%c3_82, %c0_83, %c0_84] : memref<4x8x1xf32, #tpu.memory_space<vmem>>, vector<1x8x1xf32>
      %141 = vector.shape_cast %140 : vector<1x8x1xf32> to vector<8x1xf32>
      %142 = vector.shape_cast %139 : vector<8x1xf32> to vector<1x8x1xf32>
      tpu.vector_store %arg9[%c3_82, %c0_83, %c0_84], %142 {strides = array<i32>} : memref<4x8x1xf32, #tpu.memory_space<vmem>>, vector<1x8x1xf32>,
      %c3_85 = arith.constant 3 : index
      %c0_86 = arith.constant 0 : index
      %c0_87 = arith.constant 0 : index
      %143 = vector.load %arg10[%c3_85, %c0_86, %c0_87] : memref<4x8x8xf32, #tpu.memory_space<vmem>>, vector<1x8x8xf32>
      %144 = vector.shape_cast %143 : vector<1x8x8xf32> to vector<8x8xf32>
      %145 = vector.broadcast %130 : vector<8x1xf32> to vector<8x8xf32>
      %146 = arith.mulf %145, %144 : vector<8x8xf32>
      %cst_88 = arith.constant dense<0.000000e+00> : vector<8x8xf32>
      %147 = tpu.matmul %133, %122, %cst_88 {dimension_numbers = #tpu.dot_dimension_numbers<[1], [0], [0], [1], [0, 0, 1, 1], [], []>} : vector<8x8xf32>, vector<8x8xf32>, vector<8x8xf32> -> vector<8x8xf32>
      %148 = arith.addf %146, %147 : vector<8x8xf32>
      %c3_89 = arith.constant 3 : index
      %c0_90 = arith.constant 0 : index
      %c0_91 = arith.constant 0 : index
      %149 = vector.load %arg10[%c3_89, %c0_90, %c0_91] : memref<4x8x8xf32, #tpu.memory_space<vmem>>, vector<1x8x8xf32>
      %150 = vector.shape_cast %149 : vector<1x8x8xf32> to vector<8x8xf32>
      %151 = vector.shape_cast %148 : vector<8x8xf32> to vector<1x8x8xf32>
      tpu.vector_store %arg10[%c3_89, %c0_90, %c0_91], %151 {strides = array<i32>} : memref<4x8x8xf32, #tpu.memory_space<vmem>>, vector<1x8x8xf32>,
      %c3_92 = arith.constant 3 : index
      %c0_93 = arith.constant 0 : index
      %c0_94 = arith.constant 0 : index
      %152 = vector.load %arg8[%c3_92, %c0_93, %c0_94] : memref<4x8x1xf32, #tpu.memory_space<vmem>>, vector<1x8x1xf32>
      %153 = vector.shape_cast %152 : vector<1x8x1xf32> to vector<8x1xf32>
      %154 = vector.shape_cast %128 : vector<8x1xf32> to vector<1x8x1xf32>
      tpu.vector_store %arg8[%c3_92, %c0_93, %c0_94], %154 {strides = array<i32>} : memref<4x8x1xf32, #tpu.memory_space<vmem>>, vector<1x8x1xf32>,
    } else {
    }
    %6 = arith.cmpi eq, %arg3, %arg2 : i32
    %7 = arith.extui %6 : i1 to i32
    %c0_i32_2 = arith.constant 0 : i32
    %8 = arith.cmpi ne, %7, %c0_i32_2 : i32
    scf.if %8 {
      %c0 = arith.constant 0 : index
      %c0_3 = arith.constant 0 : index
      %c0_4 = arith.constant 0 : index
      %9 = vector.load %arg4[%c0, %c0_3, %c0_4] : memref<1x8x32xf32, #tpu.memory_space<vmem>>, vector<1x8x32xf32>
      %10 = vector.shape_cast %9 : vector<1x8x32xf32> to vector<8x32xf32>
      %c0_5 = arith.constant 0 : index
      %c0_6 = arith.constant 0 : index
      %c0_7 = arith.constant 0 : index
      %11 = vector.load %arg5[%c0_5, %c0_6, %c0_7] : memref<1x8x32xf32, #tpu.memory_space<vmem>>, vector<1x8x32xf32>
      %12 = vector.shape_cast %11 : vector<1x8x32xf32> to vector<8x32xf32>
      %c0_8 = arith.constant 0 : index
      %c0_9 = arith.constant 0 : index
      %c0_10 = arith.constant 0 : index
      %13 = vector.load %arg6[%c0_8, %c0_9, %c0_10] : memref<1x8x32xf32, #tpu.memory_space<vmem>>, vector<1x8x32xf32>
      %14 = vector.shape_cast %13 : vector<1x8x32xf32> to vector<8x32xf32>
      %15 = vector.extract_strided_slice %10 {offsets = [0, 0], sizes = [8, 8], strides = [1, 1]} : vector<8x32xf32> to vector<8x8xf32>
      %16 = vector.extract_strided_slice %12 {offsets = [0, 0], sizes = [8, 8], strides = [1, 1]} : vector<8x32xf32> to vector<8x8xf32>
      %17 = vector.extract_strided_slice %14 {offsets = [0, 0], sizes = [8, 8], strides = [1, 1]} : vector<8x32xf32> to vector<8x8xf32>
      %cst = arith.constant dense<0.000000e+00> : vector<8x8xf32>
      %18 = tpu.matmul %15, %16, %cst {dimension_numbers = #tpu.dot_dimension_numbers<[1], [1], [0], [0], [0, 0, 1, 0], [], []>} : vector<8x8xf32>, vector<8x8xf32>, vector<8x8xf32> -> vector<8x8xf32>
      %c8_i32 = arith.constant 8 : i32
      %19 = arith.muli %arg2, %c8_i32 : i32
      %20 = tpu.iota {dimensions = array<i32: 0>} : vector<8x8xi32>
      %21 = vector.broadcast %19 : i32 to vector<8x8xi32>
      %22 = arith.addi %21, %20 : vector<8x8xi32>
      %c8_i32_11 = arith.constant 8 : i32
      %23 = arith.muli %arg3, %c8_i32_11 : i32
      %24 = tpu.iota {dimensions = array<i32: 1>} : vector<8x8xi32>
      %25 = vector.broadcast %23 : i32 to vector<8x8xi32>
      %26 = arith.addi %25, %24 : vector<8x8xi32>
      %27 = arith.cmpi sle, %26, %22 : vector<8x8xi32>
      %cst_12 = arith.constant -1.000000e+30 : f32
      %28 = vector.broadcast %cst_12 : f32 to vector<8x8xf32>
      %29 = arith.select %27, %18, %28 : vector<8x8xi1>, vector<8x8xf32>
      %c0_13 = arith.constant 0 : index
      %c0_14 = arith.constant 0 : index
      %c0_15 = arith.constant 0 : index
      %30 = vector.load %arg8[%c0_13, %c0_14, %c0_15] : memref<4x8x1xf32, #tpu.memory_space<vmem>>, vector<1x8x1xf32>
      %31 = vector.shape_cast %30 : vector<1x8x1xf32> to vector<8x1xf32>
      %cst_16 = arith.constant dense<0xFF800000> : vector<8xf32>
      %32 = vector.multi_reduction <maximumf>, %29, %cst_16 [1] : vector<8x8xf32> to vector<8xf32>
      %33 = vector.shape_cast %32 : vector<8xf32> to vector<8x1xf32>
      %34 = arith.maximumf %31, %33 : vector<8x1xf32>
      %35 = arith.subf %31, %34 : vector<8x1xf32>
      %36 = math.exp %35 : vector<8x1xf32>
      %37 = vector.broadcast %34 : vector<8x1xf32> to vector<8x8xf32>
      %38 = arith.subf %29, %37 : vector<8x8xf32>
      %39 = math.exp %38 : vector<8x8xf32>
      %c0_17 = arith.constant 0 : index
      %c0_18 = arith.constant 0 : index
      %c0_19 = arith.constant 0 : index
      %40 = vector.load %arg9[%c0_17, %c0_18, %c0_19] : memref<4x8x1xf32, #tpu.memory_space<vmem>>, vector<1x8x1xf32>
      %41 = vector.shape_cast %40 : vector<1x8x1xf32> to vector<8x1xf32>
      %42 = arith.mulf %36, %41 : vector<8x1xf32>
      %cst_20 = arith.constant dense<0.000000e+00> : vector<8xf32>
      %43 = vector.multi_reduction <add>, %39, %cst_20 [1] : vector<8x8xf32> to vector<8xf32>
      %44 = vector.shape_cast %43 : vector<8xf32> to vector<8x1xf32>
      %45 = arith.addf %42, %44 : vector<8x1xf32>
      %c0_21 = arith.constant 0 : index
      %c0_22 = arith.constant 0 : index
      %c0_23 = arith.constant 0 : index
      %46 = vector.load %arg9[%c0_21, %c0_22, %c0_23] : memref<4x8x1xf32, #tpu.memory_space<vmem>>, vector<1x8x1xf32>
      %47 = vector.shape_cast %46 : vector<1x8x1xf32> to vector<8x1xf32>
      %48 = vector.shape_cast %45 : vector<8x1xf32> to vector<1x8x1xf32>
      tpu.vector_store %arg9[%c0_21, %c0_22, %c0_23], %48 {strides = array<i32>} : memref<4x8x1xf32, #tpu.memory_space<vmem>>, vector<1x8x1xf32>,
      %c0_24 = arith.constant 0 : index
      %c0_25 = arith.constant 0 : index
      %c0_26 = arith.constant 0 : index
      %49 = vector.load %arg10[%c0_24, %c0_25, %c0_26] : memref<4x8x8xf32, #tpu.memory_space<vmem>>, vector<1x8x8xf32>
      %50 = vector.shape_cast %49 : vector<1x8x8xf32> to vector<8x8xf32>
      %51 = vector.broadcast %36 : vector<8x1xf32> to vector<8x8xf32>
      %52 = arith.mulf %51, %50 : vector<8x8xf32>
      %cst_27 = arith.constant dense<0.000000e+00> : vector<8x8xf32>
      %53 = tpu.matmul %39, %17, %cst_27 {dimension_numbers = #tpu.dot_dimension_numbers<[1], [0], [0], [1], [0, 0, 1, 1], [], []>} : vector<8x8xf32>, vector<8x8xf32>, vector<8x8xf32> -> vector<8x8xf32>
      %54 = arith.addf %52, %53 : vector<8x8xf32>
      %c0_28 = arith.constant 0 : index
      %c0_29 = arith.constant 0 : index
      %c0_30 = arith.constant 0 : index
      %55 = vector.load %arg10[%c0_28, %c0_29, %c0_30] : memref<4x8x8xf32, #tpu.memory_space<vmem>>, vector<1x8x8xf32>
      %56 = vector.shape_cast %55 : vector<1x8x8xf32> to vector<8x8xf32>
      %57 = vector.shape_cast %54 : vector<8x8xf32> to vector<1x8x8xf32>
      tpu.vector_store %arg10[%c0_28, %c0_29, %c0_30], %57 {strides = array<i32>} : memref<4x8x8xf32, #tpu.memory_space<vmem>>, vector<1x8x8xf32>,
      %c0_31 = arith.constant 0 : index
      %c0_32 = arith.constant 0 : index
      %c0_33 = arith.constant 0 : index
      %58 = vector.load %arg8[%c0_31, %c0_32, %c0_33] : memref<4x8x1xf32, #tpu.memory_space<vmem>>, vector<1x8x1xf32>
      %59 = vector.shape_cast %58 : vector<1x8x1xf32> to vector<8x1xf32>
      %60 = vector.shape_cast %34 : vector<8x1xf32> to vector<1x8x1xf32>
      tpu.vector_store %arg8[%c0_31, %c0_32, %c0_33], %60 {strides = array<i32>} : memref<4x8x1xf32, #tpu.memory_space<vmem>>, vector<1x8x1xf32>,
      %61 = vector.extract_strided_slice %10 {offsets = [0, 8], sizes = [8, 8], strides = [1, 1]} : vector<8x32xf32> to vector<8x8xf32>
      %62 = vector.extract_strided_slice %12 {offsets = [0, 8], sizes = [8, 8], strides = [1, 1]} : vector<8x32xf32> to vector<8x8xf32>
      %63 = vector.extract_strided_slice %14 {offsets = [0, 8], sizes = [8, 8], strides = [1, 1]} : vector<8x32xf32> to vector<8x8xf32>
      %cst_34 = arith.constant dense<0.000000e+00> : vector<8x8xf32>
      %64 = tpu.matmul %61, %62, %cst_34 {dimension_numbers = #tpu.dot_dimension_numbers<[1], [1], [0], [0], [0, 0, 1, 0], [], []>} : vector<8x8xf32>, vector<8x8xf32>, vector<8x8xf32> -> vector<8x8xf32>
      %c8_i32_35 = arith.constant 8 : i32
      %65 = arith.muli %arg2, %c8_i32_35 : i32
      %66 = tpu.iota {dimensions = array<i32: 0>} : vector<8x8xi32>
      %67 = vector.broadcast %65 : i32 to vector<8x8xi32>
      %68 = arith.addi %67, %66 : vector<8x8xi32>
      %c8_i32_36 = arith.constant 8 : i32
      %69 = arith.muli %arg3, %c8_i32_36 : i32
      %70 = tpu.iota {dimensions = array<i32: 1>} : vector<8x8xi32>
      %71 = vector.broadcast %69 : i32 to vector<8x8xi32>
      %72 = arith.addi %71, %70 : vector<8x8xi32>
      %73 = arith.cmpi sle, %72, %68 : vector<8x8xi32>
      %cst_37 = arith.constant -1.000000e+30 : f32
      %74 = vector.broadcast %cst_37 : f32 to vector<8x8xf32>
      %75 = arith.select %73, %64, %74 : vector<8x8xi1>, vector<8x8xf32>
      %c1 = arith.constant 1 : index
      %c0_38 = arith.constant 0 : index
      %c0_39 = arith.constant 0 : index
      %76 = vector.load %arg8[%c1, %c0_38, %c0_39] : memref<4x8x1xf32, #tpu.memory_space<vmem>>, vector<1x8x1xf32>
      %77 = vector.shape_cast %76 : vector<1x8x1xf32> to vector<8x1xf32>
      %cst_40 = arith.constant dense<0xFF800000> : vector<8xf32>
      %78 = vector.multi_reduction <maximumf>, %75, %cst_40 [1] : vector<8x8xf32> to vector<8xf32>
      %79 = vector.shape_cast %78 : vector<8xf32> to vector<8x1xf32>
      %80 = arith.maximumf %77, %79 : vector<8x1xf32>
      %81 = arith.subf %77, %80 : vector<8x1xf32>
      %82 = math.exp %81 : vector<8x1xf32>
      %83 = vector.broadcast %80 : vector<8x1xf32> to vector<8x8xf32>
      %84 = arith.subf %75, %83 : vector<8x8xf32>
      %85 = math.exp %84 : vector<8x8xf32>
      %c1_41 = arith.constant 1 : index
      %c0_42 = arith.constant 0 : index
      %c0_43 = arith.constant 0 : index
      %86 = vector.load %arg9[%c1_41, %c0_42, %c0_43] : memref<4x8x1xf32, #tpu.memory_space<vmem>>, vector<1x8x1xf32>
      %87 = vector.shape_cast %86 : vector<1x8x1xf32> to vector<8x1xf32>
      %88 = arith.mulf %82, %87 : vector<8x1xf32>
      %cst_44 = arith.constant dense<0.000000e+00> : vector<8xf32>
      %89 = vector.multi_reduction <add>, %85, %cst_44 [1] : vector<8x8xf32> to vector<8xf32>
      %90 = vector.shape_cast %89 : vector<8xf32> to vector<8x1xf32>
      %91 = arith.addf %88, %90 : vector<8x1xf32>
      %c1_45 = arith.constant 1 : index
      %c0_46 = arith.constant 0 : index
      %c0_47 = arith.constant 0 : index
      %92 = vector.load %arg9[%c1_45, %c0_46, %c0_47] : memref<4x8x1xf32, #tpu.memory_space<vmem>>, vector<1x8x1xf32>
      %93 = vector.shape_cast %92 : vector<1x8x1xf32> to vector<8x1xf32>
      %94 = vector.shape_cast %91 : vector<8x1xf32> to vector<1x8x1xf32>
      tpu.vector_store %arg9[%c1_45, %c0_46, %c0_47], %94 {strides = array<i32>} : memref<4x8x1xf32, #tpu.memory_space<vmem>>, vector<1x8x1xf32>,
      %c1_48 = arith.constant 1 : index
      %c0_49 = arith.constant 0 : index
      %c0_50 = arith.constant 0 : index
      %95 = vector.load %arg10[%c1_48, %c0_49, %c0_50] : memref<4x8x8xf32, #tpu.memory_space<vmem>>, vector<1x8x8xf32>
      %96 = vector.shape_cast %95 : vector<1x8x8xf32> to vector<8x8xf32>
      %97 = vector.broadcast %82 : vector<8x1xf32> to vector<8x8xf32>
      %98 = arith.mulf %97, %96 : vector<8x8xf32>
      %cst_51 = arith.constant dense<0.000000e+00> : vector<8x8xf32>
      %99 = tpu.matmul %85, %63, %cst_51 {dimension_numbers = #tpu.dot_dimension_numbers<[1], [0], [0], [1], [0, 0, 1, 1], [], []>} : vector<8x8xf32>, vector<8x8xf32>, vector<8x8xf32> -> vector<8x8xf32>
      %100 = arith.addf %98, %99 : vector<8x8xf32>
      %c1_52 = arith.constant 1 : index
      %c0_53 = arith.constant 0 : index
      %c0_54 = arith.constant 0 : index
      %101 = vector.load %arg10[%c1_52, %c0_53, %c0_54] : memref<4x8x8xf32, #tpu.memory_space<vmem>>, vector<1x8x8xf32>
      %102 = vector.shape_cast %101 : vector<1x8x8xf32> to vector<8x8xf32>
      %103 = vector.shape_cast %100 : vector<8x8xf32> to vector<1x8x8xf32>
      tpu.vector_store %arg10[%c1_52, %c0_53, %c0_54], %103 {strides = array<i32>} : memref<4x8x8xf32, #tpu.memory_space<vmem>>, vector<1x8x8xf32>,
      %c1_55 = arith.constant 1 : index
      %c0_56 = arith.constant 0 : index
      %c0_57 = arith.constant 0 : index
      %104 = vector.load %arg8[%c1_55, %c0_56, %c0_57] : memref<4x8x1xf32, #tpu.memory_space<vmem>>, vector<1x8x1xf32>
      %105 = vector.shape_cast %104 : vector<1x8x1xf32> to vector<8x1xf32>
      %106 = vector.shape_cast %80 : vector<8x1xf32> to vector<1x8x1xf32>
      tpu.vector_store %arg8[%c1_55, %c0_56, %c0_57], %106 {strides = array<i32>} : memref<4x8x1xf32, #tpu.memory_space<vmem>>, vector<1x8x1xf32>,
      %107 = vector.extract_strided_slice %10 {offsets = [0, 16], sizes = [8, 8], strides = [1, 1]} : vector<8x32xf32> to vector<8x8xf32>
      %108 = vector.extract_strided_slice %12 {offsets = [0, 16], sizes = [8, 8], strides = [1, 1]} : vector<8x32xf32> to vector<8x8xf32>
      %109 = vector.extract_strided_slice %14 {offsets = [0, 16], sizes = [8, 8], strides = [1, 1]} : vector<8x32xf32> to vector<8x8xf32>
      %cst_58 = arith.constant dense<0.000000e+00> : vector<8x8xf32>
      %110 = tpu.matmul %107, %108, %cst_58 {dimension_numbers = #tpu.dot_dimension_numbers<[1], [1], [0], [0], [0, 0, 1, 0], [], []>} : vector<8x8xf32>, vector<8x8xf32>, vector<8x8xf32> -> vector<8x8xf32>
      %c8_i32_59 = arith.constant 8 : i32
      %111 = arith.muli %arg2, %c8_i32_59 : i32
      %112 = tpu.iota {dimensions = array<i32: 0>} : vector<8x8xi32>
      %113 = vector.broadcast %111 : i32 to vector<8x8xi32>
      %114 = arith.addi %113, %112 : vector<8x8xi32>
      %c8_i32_60 = arith.constant 8 : i32
      %115 = arith.muli %arg3, %c8_i32_60 : i32
      %116 = tpu.iota {dimensions = array<i32: 1>} : vector<8x8xi32>
      %117 = vector.broadcast %115 : i32 to vector<8x8xi32>
      %118 = arith.addi %117, %116 : vector<8x8xi32>
      %119 = arith.cmpi sle, %118, %114 : vector<8x8xi32>
      %cst_61 = arith.constant -1.000000e+30 : f32
      %120 = vector.broadcast %cst_61 : f32 to vector<8x8xf32>
      %121 = arith.select %119, %110, %120 : vector<8x8xi1>, vector<8x8xf32>
      %c2 = arith.constant 2 : index
      %c0_62 = arith.constant 0 : index
      %c0_63 = arith.constant 0 : index
      %122 = vector.load %arg8[%c2, %c0_62, %c0_63] : memref<4x8x1xf32, #tpu.memory_space<vmem>>, vector<1x8x1xf32>
      %123 = vector.shape_cast %122 : vector<1x8x1xf32> to vector<8x1xf32>
      %cst_64 = arith.constant dense<0xFF800000> : vector<8xf32>
      %124 = vector.multi_reduction <maximumf>, %121, %cst_64 [1] : vector<8x8xf32> to vector<8xf32>
      %125 = vector.shape_cast %124 : vector<8xf32> to vector<8x1xf32>
      %126 = arith.maximumf %123, %125 : vector<8x1xf32>
      %127 = arith.subf %123, %126 : vector<8x1xf32>
      %128 = math.exp %127 : vector<8x1xf32>
      %129 = vector.broadcast %126 : vector<8x1xf32> to vector<8x8xf32>
      %130 = arith.subf %121, %129 : vector<8x8xf32>
      %131 = math.exp %130 : vector<8x8xf32>
      %c2_65 = arith.constant 2 : index
      %c0_66 = arith.constant 0 : index
      %c0_67 = arith.constant 0 : index
      %132 = vector.load %arg9[%c2_65, %c0_66, %c0_67] : memref<4x8x1xf32, #tpu.memory_space<vmem>>, vector<1x8x1xf32>
      %133 = vector.shape_cast %132 : vector<1x8x1xf32> to vector<8x1xf32>
      %134 = arith.mulf %128, %133 : vector<8x1xf32>
      %cst_68 = arith.constant dense<0.000000e+00> : vector<8xf32>
      %135 = vector.multi_reduction <add>, %131, %cst_68 [1] : vector<8x8xf32> to vector<8xf32>
      %136 = vector.shape_cast %135 : vector<8xf32> to vector<8x1xf32>
      %137 = arith.addf %134, %136 : vector<8x1xf32>
      %c2_69 = arith.constant 2 : index
      %c0_70 = arith.constant 0 : index
      %c0_71 = arith.constant 0 : index
      %138 = vector.load %arg9[%c2_69, %c0_70, %c0_71] : memref<4x8x1xf32, #tpu.memory_space<vmem>>, vector<1x8x1xf32>
      %139 = vector.shape_cast %138 : vector<1x8x1xf32> to vector<8x1xf32>
      %140 = vector.shape_cast %137 : vector<8x1xf32> to vector<1x8x1xf32>
      tpu.vector_store %arg9[%c2_69, %c0_70, %c0_71], %140 {strides = array<i32>} : memref<4x8x1xf32, #tpu.memory_space<vmem>>, vector<1x8x1xf32>,
      %c2_72 = arith.constant 2 : index
      %c0_73 = arith.constant 0 : index
      %c0_74 = arith.constant 0 : index
      %141 = vector.load %arg10[%c2_72, %c0_73, %c0_74] : memref<4x8x8xf32, #tpu.memory_space<vmem>>, vector<1x8x8xf32>
      %142 = vector.shape_cast %141 : vector<1x8x8xf32> to vector<8x8xf32>
      %143 = vector.broadcast %128 : vector<8x1xf32> to vector<8x8xf32>
      %144 = arith.mulf %143, %142 : vector<8x8xf32>
      %cst_75 = arith.constant dense<0.000000e+00> : vector<8x8xf32>
      %145 = tpu.matmul %131, %109, %cst_75 {dimension_numbers = #tpu.dot_dimension_numbers<[1], [0], [0], [1], [0, 0, 1, 1], [], []>} : vector<8x8xf32>, vector<8x8xf32>, vector<8x8xf32> -> vector<8x8xf32>
      %146 = arith.addf %144, %145 : vector<8x8xf32>
      %c2_76 = arith.constant 2 : index
      %c0_77 = arith.constant 0 : index
      %c0_78 = arith.constant 0 : index
      %147 = vector.load %arg10[%c2_76, %c0_77, %c0_78] : memref<4x8x8xf32, #tpu.memory_space<vmem>>, vector<1x8x8xf32>
      %148 = vector.shape_cast %147 : vector<1x8x8xf32> to vector<8x8xf32>
      %149 = vector.shape_cast %146 : vector<8x8xf32> to vector<1x8x8xf32>
      tpu.vector_store %arg10[%c2_76, %c0_77, %c0_78], %149 {strides = array<i32>} : memref<4x8x8xf32, #tpu.memory_space<vmem>>, vector<1x8x8xf32>,
      %c2_79 = arith.constant 2 : index
      %c0_80 = arith.constant 0 : index
      %c0_81 = arith.constant 0 : index
      %150 = vector.load %arg8[%c2_79, %c0_80, %c0_81] : memref<4x8x1xf32, #tpu.memory_space<vmem>>, vector<1x8x1xf32>
      %151 = vector.shape_cast %150 : vector<1x8x1xf32> to vector<8x1xf32>
      %152 = vector.shape_cast %126 : vector<8x1xf32> to vector<1x8x1xf32>
      tpu.vector_store %arg8[%c2_79, %c0_80, %c0_81], %152 {strides = array<i32>} : memref<4x8x1xf32, #tpu.memory_space<vmem>>, vector<1x8x1xf32>,
      %153 = vector.extract_strided_slice %10 {offsets = [0, 24], sizes = [8, 8], strides = [1, 1]} : vector<8x32xf32> to vector<8x8xf32>
      %154 = vector.extract_strided_slice %12 {offsets = [0, 24], sizes = [8, 8], strides = [1, 1]} : vector<8x32xf32> to vector<8x8xf32>
      %155 = vector.extract_strided_slice %14 {offsets = [0, 24], sizes = [8, 8], strides = [1, 1]} : vector<8x32xf32> to vector<8x8xf32>
      %cst_82 = arith.constant dense<0.000000e+00> : vector<8x8xf32>
      %156 = tpu.matmul %153, %154, %cst_82 {dimension_numbers = #tpu.dot_dimension_numbers<[1], [1], [0], [0], [0, 0, 1, 0], [], []>} : vector<8x8xf32>, vector<8x8xf32>, vector<8x8xf32> -> vector<8x8xf32>
      %c8_i32_83 = arith.constant 8 : i32
      %157 = arith.muli %arg2, %c8_i32_83 : i32
      %158 = tpu.iota {dimensions = array<i32: 0>} : vector<8x8xi32>
      %159 = vector.broadcast %157 : i32 to vector<8x8xi32>
      %160 = arith.addi %159, %158 : vector<8x8xi32>
      %c8_i32_84 = arith.constant 8 : i32
      %161 = arith.muli %arg3, %c8_i32_84 : i32
      %162 = tpu.iota {dimensions = array<i32: 1>} : vector<8x8xi32>
      %163 = vector.broadcast %161 : i32 to vector<8x8xi32>
      %164 = arith.addi %163, %162 : vector<8x8xi32>
      %165 = arith.cmpi sle, %164, %160 : vector<8x8xi32>
      %cst_85 = arith.constant -1.000000e+30 : f32
      %166 = vector.broadcast %cst_85 : f32 to vector<8x8xf32>
      %167 = arith.select %165, %156, %166 : vector<8x8xi1>, vector<8x8xf32>
      %c3 = arith.constant 3 : index
      %c0_86 = arith.constant 0 : index
      %c0_87 = arith.constant 0 : index
      %168 = vector.load %arg8[%c3, %c0_86, %c0_87] : memref<4x8x1xf32, #tpu.memory_space<vmem>>, vector<1x8x1xf32>
      %169 = vector.shape_cast %168 : vector<1x8x1xf32> to vector<8x1xf32>
      %cst_88 = arith.constant dense<0xFF800000> : vector<8xf32>
      %170 = vector.multi_reduction <maximumf>, %167, %cst_88 [1] : vector<8x8xf32> to vector<8xf32>
      %171 = vector.shape_cast %170 : vector<8xf32> to vector<8x1xf32>
      %172 = arith.maximumf %169, %171 : vector<8x1xf32>
      %173 = arith.subf %169, %172 : vector<8x1xf32>
      %174 = math.exp %173 : vector<8x1xf32>
      %175 = vector.broadcast %172 : vector<8x1xf32> to vector<8x8xf32>
      %176 = arith.subf %167, %175 : vector<8x8xf32>
      %177 = math.exp %176 : vector<8x8xf32>
      %c3_89 = arith.constant 3 : index
      %c0_90 = arith.constant 0 : index
      %c0_91 = arith.constant 0 : index
      %178 = vector.load %arg9[%c3_89, %c0_90, %c0_91] : memref<4x8x1xf32, #tpu.memory_space<vmem>>, vector<1x8x1xf32>
      %179 = vector.shape_cast %178 : vector<1x8x1xf32> to vector<8x1xf32>
      %180 = arith.mulf %174, %179 : vector<8x1xf32>
      %cst_92 = arith.constant dense<0.000000e+00> : vector<8xf32>
      %181 = vector.multi_reduction <add>, %177, %cst_92 [1] : vector<8x8xf32> to vector<8xf32>
      %182 = vector.shape_cast %181 : vector<8xf32> to vector<8x1xf32>
      %183 = arith.addf %180, %182 : vector<8x1xf32>
      %c3_93 = arith.constant 3 : index
      %c0_94 = arith.constant 0 : index
      %c0_95 = arith.constant 0 : index
      %184 = vector.load %arg9[%c3_93, %c0_94, %c0_95] : memref<4x8x1xf32, #tpu.memory_space<vmem>>, vector<1x8x1xf32>
      %185 = vector.shape_cast %184 : vector<1x8x1xf32> to vector<8x1xf32>
      %186 = vector.shape_cast %183 : vector<8x1xf32> to vector<1x8x1xf32>
      tpu.vector_store %arg9[%c3_93, %c0_94, %c0_95], %186 {strides = array<i32>} : memref<4x8x1xf32, #tpu.memory_space<vmem>>, vector<1x8x1xf32>,
      %c3_96 = arith.constant 3 : index
      %c0_97 = arith.constant 0 : index
      %c0_98 = arith.constant 0 : index
      %187 = vector.load %arg10[%c3_96, %c0_97, %c0_98] : memref<4x8x8xf32, #tpu.memory_space<vmem>>, vector<1x8x8xf32>
      %188 = vector.shape_cast %187 : vector<1x8x8xf32> to vector<8x8xf32>
      %189 = vector.broadcast %174 : vector<8x1xf32> to vector<8x8xf32>
      %190 = arith.mulf %189, %188 : vector<8x8xf32>
      %cst_99 = arith.constant dense<0.000000e+00> : vector<8x8xf32>
      %191 = tpu.matmul %177, %155, %cst_99 {dimension_numbers = #tpu.dot_dimension_numbers<[1], [0], [0], [1], [0, 0, 1, 1], [], []>} : vector<8x8xf32>, vector<8x8xf32>, vector<8x8xf32> -> vector<8x8xf32>
      %192 = arith.addf %190, %191 : vector<8x8xf32>
      %c3_100 = arith.constant 3 : index
      %c0_101 = arith.constant 0 : index
      %c0_102 = arith.constant 0 : index
      %193 = vector.load %arg10[%c3_100, %c0_101, %c0_102] : memref<4x8x8xf32, #tpu.memory_space<vmem>>, vector<1x8x8xf32>
      %194 = vector.shape_cast %193 : vector<1x8x8xf32> to vector<8x8xf32>
      %195 = vector.shape_cast %192 : vector<8x8xf32> to vector<1x8x8xf32>
      tpu.vector_store %arg10[%c3_100, %c0_101, %c0_102], %195 {strides = array<i32>} : memref<4x8x8xf32, #tpu.memory_space<vmem>>, vector<1x8x8xf32>,
      %c3_103 = arith.constant 3 : index
      %c0_104 = arith.constant 0 : index
      %c0_105 = arith.constant 0 : index
      %196 = vector.load %arg8[%c3_103, %c0_104, %c0_105] : memref<4x8x1xf32, #tpu.memory_space<vmem>>, vector<1x8x1xf32>
      %197 = vector.shape_cast %196 : vector<1x8x1xf32> to vector<8x1xf32>
      %198 = vector.shape_cast %172 : vector<8x1xf32> to vector<1x8x1xf32>
      tpu.vector_store %arg8[%c3_103, %c0_104, %c0_105], %198 {strides = array<i32>} : memref<4x8x1xf32, #tpu.memory_space<vmem>>, vector<1x8x1xf32>,
      %c0_106 = arith.constant 0 : index
      %c0_107 = arith.constant 0 : index
      %c0_108 = arith.constant 0 : index
      %199 = vector.load %arg10[%c0_106, %c0_107, %c0_108] : memref<4x8x8xf32, #tpu.memory_space<vmem>>, vector<1x8x8xf32>
      %200 = vector.shape_cast %199 : vector<1x8x8xf32> to vector<8x8xf32>
      %c0_109 = arith.constant 0 : index
      %c0_110 = arith.constant 0 : index
      %c0_111 = arith.constant 0 : index
      %201 = vector.load %arg9[%c0_109, %c0_110, %c0_111] : memref<4x8x1xf32, #tpu.memory_space<vmem>>, vector<1x8x1xf32>
      %202 = vector.shape_cast %201 : vector<1x8x1xf32> to vector<8x1xf32>
      %203 = tpu.reciprocal %202 {approx = true} : vector<8x1xf32> -> vector<8x1xf32>
      %204 = vector.broadcast %203 : vector<8x1xf32> to vector<8x8xf32>
      %205 = arith.mulf %200, %204 : vector<8x8xf32>
      %c0_112 = arith.constant 0 : index
      %c0_113 = arith.constant 0 : index
      %c0_114 = arith.constant 0 : index
      %206 = vector.load %arg7[%c0_112, %c0_113, %c0_114] : memref<1x8x32xf32, #tpu.memory_space<vmem>>, vector<1x8x8xf32>
      %207 = vector.shape_cast %206 : vector<1x8x8xf32> to vector<8x8xf32>
      %208 = vector.shape_cast %205 : vector<8x8xf32> to vector<1x8x8xf32>
      tpu.vector_store %arg7[%c0_112, %c0_113, %c0_114], %208 {strides = array<i32>} : memref<1x8x32xf32, #tpu.memory_space<vmem>>, vector<1x8x8xf32>,
      %c1_115 = arith.constant 1 : index
      %c0_116 = arith.constant 0 : index
      %c0_117 = arith.constant 0 : index
      %209 = vector.load %arg10[%c1_115, %c0_116, %c0_117] : memref<4x8x8xf32, #tpu.memory_space<vmem>>, vector<1x8x8xf32>
      %210 = vector.shape_cast %209 : vector<1x8x8xf32> to vector<8x8xf32>
      %c1_118 = arith.constant 1 : index
      %c0_119 = arith.constant 0 : index
      %c0_120 = arith.constant 0 : index
      %211 = vector.load %arg9[%c1_118, %c0_119, %c0_120] : memref<4x8x1xf32, #tpu.memory_space<vmem>>, vector<1x8x1xf32>
      %212 = vector.shape_cast %211 : vector<1x8x1xf32> to vector<8x1xf32>
      %213 = tpu.reciprocal %212 {approx = true} : vector<8x1xf32> -> vector<8x1xf32>
      %214 = vector.broadcast %213 : vector<8x1xf32> to vector<8x8xf32>
      %215 = arith.mulf %210, %214 : vector<8x8xf32>
      %c0_121 = arith.constant 0 : index
      %c0_122 = arith.constant 0 : index
      %c8 = arith.constant 8 : index
      %216 = vector.load %arg7[%c0_121, %c0_122, %c8] : memref<1x8x32xf32, #tpu.memory_space<vmem>>, vector<1x8x8xf32>
      %217 = vector.shape_cast %216 : vector<1x8x8xf32> to vector<8x8xf32>
      %218 = vector.shape_cast %215 : vector<8x8xf32> to vector<1x8x8xf32>
      tpu.vector_store %arg7[%c0_121, %c0_122, %c8], %218 {strides = array<i32>} : memref<1x8x32xf32, #tpu.memory_space<vmem>>, vector<1x8x8xf32>,
      %c2_123 = arith.constant 2 : index
      %c0_124 = arith.constant 0 : index
      %c0_125 = arith.constant 0 : index
      %219 = vector.load %arg10[%c2_123, %c0_124, %c0_125] : memref<4x8x8xf32, #tpu.memory_space<vmem>>, vector<1x8x8xf32>
      %220 = vector.shape_cast %219 : vector<1x8x8xf32> to vector<8x8xf32>
      %c2_126 = arith.constant 2 : index
      %c0_127 = arith.constant 0 : index
      %c0_128 = arith.constant 0 : index
      %221 = vector.load %arg9[%c2_126, %c0_127, %c0_128] : memref<4x8x1xf32, #tpu.memory_space<vmem>>, vector<1x8x1xf32>
      %222 = vector.shape_cast %221 : vector<1x8x1xf32> to vector<8x1xf32>
      %223 = tpu.reciprocal %222 {approx = true} : vector<8x1xf32> -> vector<8x1xf32>
      %224 = vector.broadcast %223 : vector<8x1xf32> to vector<8x8xf32>
      %225 = arith.mulf %220, %224 : vector<8x8xf32>
      %c0_129 = arith.constant 0 : index
      %c0_130 = arith.constant 0 : index
      %c16 = arith.constant 16 : index
      %226 = vector.load %arg7[%c0_129, %c0_130, %c16] : memref<1x8x32xf32, #tpu.memory_space<vmem>>, vector<1x8x8xf32>
      %227 = vector.shape_cast %226 : vector<1x8x8xf32> to vector<8x8xf32>
      %228 = vector.shape_cast %225 : vector<8x8xf32> to vector<1x8x8xf32>
      tpu.vector_store %arg7[%c0_129, %c0_130, %c16], %228 {strides = array<i32>} : memref<1x8x32xf32, #tpu.memory_space<vmem>>, vector<1x8x8xf32>,
      %c3_131 = arith.constant 3 : index
      %c0_132 = arith.constant 0 : index
      %c0_133 = arith.constant 0 : index
      %229 = vector.load %arg10[%c3_131, %c0_132, %c0_133] : memref<4x8x8xf32, #tpu.memory_space<vmem>>, vector<1x8x8xf32>
      %230 = vector.shape_cast %229 : vector<1x8x8xf32> to vector<8x8xf32>
      %c3_134 = arith.constant 3 : index
      %c0_135 = arith.constant 0 : index
      %c0_136 = arith.constant 0 : index
      %231 = vector.load %arg9[%c3_134, %c0_135, %c0_136] : memref<4x8x1xf32, #tpu.memory_space<vmem>>, vector<1x8x1xf32>
      %232 = vector.shape_cast %231 : vector<1x8x1xf32> to vector<8x1xf32>
      %233 = tpu.reciprocal %232 {approx = true} : vector<8x1xf32> -> vector<8x1xf32>
      %234 = vector.broadcast %233 : vector<8x1xf32> to vector<8x8xf32>
      %235 = arith.mulf %230, %234 : vector<8x8xf32>
      %c0_137 = arith.constant 0 : index
      %c0_138 = arith.constant 0 : index
      %c24 = arith.constant 24 : index
      %236 = vector.load %arg7[%c0_137, %c0_138, %c24] : memref<1x8x32xf32, #tpu.memory_space<vmem>>, vector<1x8x8xf32>
      %237 = vector.shape_cast %236 : vector<1x8x8xf32> to vector<8x8xf32>
      %238 = vector.shape_cast %235 : vector<8x8xf32> to vector<1x8x8xf32>
      tpu.vector_store %arg7[%c0_137, %c0_138, %c24], %238 {strides = array<i32>} : memref<1x8x32xf32, #tpu.memory_space<vmem>>, vector<1x8x8xf32>,
    } else {
    }
    return
  }
  func.func @transform_0(%arg0: i32, %arg1: i32, %arg2: i32, %arg3: i32) -> (i32, i32, i32) {
    %c0_i32 = arith.constant 0 : i32
    return %arg0, %arg2, %arg1 : i32, i32, i32
  }
  func.func @transform_1(%arg0: i32, %arg1: i32, %arg2: i32, %arg3: i32) -> (i32, i32, i32) {
    %0 = arith.minsi %arg3, %arg2 : i32
    %c0_i32 = arith.constant 0 : i32
    return %arg0, %0, %arg1 : i32, i32, i32
  }
  func.func @transform_2(%arg0: i32, %arg1: i32, %arg2: i32, %arg3: i32) -> (i32, i32, i32) {
    %0 = arith.minsi %arg3, %arg2 : i32
    %c0_i32 = arith.constant 0 : i32
    return %arg0, %0, %arg1 : i32, i32, i32
  }
  func.func @transform_3(%arg0: i32, %arg1: i32, %arg2: i32, %arg3: i32) -> (i32, i32, i32) {
    %c0_i32 = arith.constant 0 : i32
    return %arg0, %arg2, %arg1 : i32, i32, i32
  }
}

</mosaic_0001>

<bundles_post_ra>
// kernel: transformer_decoder_forward.7
= control target key start
LH: loop header
LB: loop body
LE: loop exit
PB: predicated region body
PF: predicated region fallthrough
CT: control target
= control target key end

     0   :  { %s693_s24 = smov 0   ;;  %s695_s25 = smov 0   ;;  %s765_s0 = inlined_call_operand.vmem [shape: f32[2,8,32], index: 0, kind: input, shape index: {}]   ;;  %s766_s1 = inlined_call_operand.vmem [shape: f32[1,32], index: 1, kind: input, shape index: {}]   ;;  %s767_s2 = inlined_call_operand.vmem [shape: f32[1,32], index: 2, kind: input, shape index: {}]   ;;  %s768_s3 = inlined_call_operand.vmem [shape: f32[32,96], index: 3, kind: input, shape index: {}]   ;;  %s769_s4 = inlined_call_operand.vmem [shape: f32[1,96], index: 4, kind: input, shape index: {}]   ;;  %s770_s5 = inlined_call_operand.vmem [shape: f32[2,8,32], index: 5, kind: output, shape index: {0}]   ;;  %s771_s6 = inlined_call_operand.vmem [shape: f32[2,8,32], index: 6, kind: output, shape index: {1}]   ;;  %s772_s7 = inlined_call_operand.vmem [shape: f32[2,8,32], index: 7, kind: output, shape index: {2}]  }
   0x1   :  { %s697_s26 = smov 0  }
   0x2 LB: > { %s30_s27 = sadd.s32 1, %s644_s25  ;;  %p584_p0 = scmp.ge.s32.totalorder %s648_s26, 1  ;;  %s648_s26 = sphi %s697_s26, %s18_s26   ;;  %s644_s25 = sphi %s695_s25, %s774_s25   ;;  %s640_s24 = sphi %s693_s24, %s773_s24  }
   0x3   : > { %p32_p1 = scmp.ge.s32.totalorder %s30_s27, 2  ;;  %p264_p2 = scmp.lt.s32.totalorder %s648_s26, 3 }
   0x5   : > { %s776_s27 = smov (%p32_p1, %s30_s27), 0  ;;  %p265_p3 = pnand %p584_p0, %p264_p2 }
   0x6   : > { %p314_p4 = scmp.lt.s32.totalorder (!%p265_p3), %s640_s24, 1  ;;  %s651_s30 = smov (!%p265_p3), 96  }
   0x7   : > { %268 = sbr.rel (%p265_p3) target bundleno = 536 (0x218), region = 40 }
   0xc   : > { %s778_s24 = smov (!%p314_p4, %s640_s24), 1  ;;  %vm345_vm0 = vcmask 261120   ;;  %v650_v2 = vmov 32.0   ;;  %v386_v14 = vld [vmem:[%s768_s3 + $0x18] sm:$0xff]  ;;  %v385_v15 = vld [vmem:[%s768_s3 + $0x10] sm:$0xff]  ;;  %v384_v16 = vld [vmem:[%s768_s3 + $0x8] sm:$0xff] }
   0xd   : > { %s711_s28 = sshll.u32 %s778_s24, 3  ;;  %622 = vrcp.f32 %v650_v2  ;;  %406 = vmatpush.msra.mxu0 %v386_v14  ;;  %v383_v17 = vld [vmem:[%s768_s3] sm:$0xff] }
   0xe   : > { %s320_s8 = scalar_lea.vmem %s765_s0, %s711_s28  ;;  %v619_v27 = vld [vmem:[%s766_s1] ss:$0 sm:$0xff]  ;;  %s327_s29 = scalar_lea.vmem %s770_s5, %s711_s28 }
   0xf   : > { %v342_v0 = vld [vmem:[%s320_s8] sm:$0xff]  ;;  %407 = vmatpush.msra.mxu0 %v385_v15  ;;  %s652_s8 = smov 64   ;;  %s334_s11 = scalar_lea.vmem %s771_s6, %s711_s28 }
  0x10   : > { %v346_v1 = vsel %vm345_vm0, %v342_v0, 0.0  ;;  %v620_v30 = vld [vmem:[%s767_s2] ss:$0 sm:$0xff]  ;;  %s341_s14 = scalar_lea.vmem %s772_s7, %s711_s28 }
  0x11   : > { %347 = vadd.xlane.f32.xlu0 %v346_v1  ;;  %408 = vmatpush.msra.mxu0 %v384_v16  ;;  %v621_v33 = vld [vmem:[%s769_s4] ss:$0 sm:$0xff] }
  0x13   : > { %v623_v3 = vpop.eup %622  ;;  %409 = vmatpush.msra.mxu0 %v383_v17 }
  0x14   : > { %v350_v4 = vmul.f32 32.0, %v623_v3  ;;  %vm354_vm1 = vweird.f32 %v623_v3 }
  0x16   : > { %v351_v5 = vsub.f32 1.0, %v350_v4 }
  0x18   : > { %v352_v6 = vmul.f32 %v623_v3, %v351_v5 }
  0x1a   : > { %v353_v7 = vadd.f32 %v623_v3, %v352_v6 }
  0x1c   : > { %v355_v8 = vsel %vm354_vm1, %v623_v3, %v353_v7 }
  0x84   : > { %v348_v9 = vpop.xlane.xlu0 %347 }
  0x85   : > { %v356_v10 = vmul.f32 %v355_v8, %v348_v9 }
  0x87   : > { %v357_v11 = vsub.f32 %v342_v0, %v356_v10 }
  0x89   : > { %v358_v12 = vmul.f32 %v357_v11, %v357_v11 }
  0x8b   : > { %v359_v13 = vsel %vm345_vm0, %v358_v12, 0.0 }
  0x8c   : > { %360 = vadd.xlane.f32.xlu0 %v359_v13 }
  0xff   : > { %v361_v18 = vpop.xlane.xlu0 %360 }
 0x100   : > { %v362_v19 = vmul.f32 %v361_v18, %v355_v8 }
 0x102   : > { %v363_v20 = vadd.f32 1e-05, %v362_v19 }
 0x104   : > { %624 = vrsqrt.f32 %v363_v20  ;;  %vm370_vm3 = vweird.f32 %v363_v20 }
 0x10a   : > { %v625_v21 = vpop.eup %624 }
 0x10b   : > { %v365_v22 = vmul.f32 %v625_v21, %v363_v20  ;;  %vm371_vm2 = vweird.f32 %v625_v21 }
 0x10c   : > { %vm372_vm4 = vmor %vm370_vm3, %vm371_vm2 }
 0x10d   : > { %v366_v23 = vmul.f32 %v625_v21, %v365_v22 }
 0x10f   : > { %v367_v24 = vmul.f32 0.5, %v366_v23 }
 0x111   : > { %v368_v25 = vsub.f32 1.5, %v367_v24 }
 0x113   : > { %v369_v26 = vmul.f32 %v625_v21, %v368_v25 }
 0x115   : > { %v373_v28 = vsel %vm372_vm4, %v625_v21, %v369_v26 }
 0x116   : > { %v374_v29 = vmul.f32 %v373_v28, %v357_v11 }
 0x118   : > { %v378_v31 = vmul.f32 %v619_v27, %v374_v29 }
 0x11a   : > { %v382_v32 = vadd.f32 %v620_v30, %v378_v31 }
 0x11c   : > { %589 = vmatmul.msk.f32.vlgmr.msra.gmra.mxu0 %vm345_vm0, %v382_v32 }
 0x199   : > { %v411_v34 = vpop.f32.mrf.mxu0 }
 0x19a   : > { %v412_v35 = vadd.f32 %v621_v33, %v411_v34 }
 0x19c   : > { %414 = vst.msk [vmem:[%s327_s29] sm:$0xff] %vm345_vm0, %v412_v35  ;;  %416 = vrot.lane.b32.xlu1 %v412_v35, %s651_s30 }
 0x1a4   : > { %420 = vrot.lane.b32.xlu1 %v412_v35, %s652_s8 }
 0x20e   : > { %v417_v36 = vpop.permute.xlu1 %416 }
 0x20f   : > { %419 = vst.msk [vmem:[%s334_s11] sm:$0xff] %vm345_vm0, %v417_v36 }
 0x216   : > { %v421_v37 = vpop.permute.xlu1 %420 }
 0x217   : > { %423 = vst.msk [vmem:[%s341_s14] sm:$0xff] %vm345_vm0, %v421_v37 }
 0x218 PF: > { %s18_s26 = sadd.s32 1, %s648_s26   ;;  %s773_s24 = smov %s644_s25 }
 0x219   : > { %p15_p5 = scmp.ge.s32.totalorder %s18_s26, 4   ;;  %s774_s25 = smov %s776_s27 }
 0x21b   :  { %17 = sbr.rel (!%p15_p5) target bundleno = 2 (0x2), region = 94 }

// kernel: transformer_decoder_forward.13
= control target key start
LH: loop header
LB: loop body
LE: loop exit
PB: predicated region body
PF: predicated region fallthrough
CT: control target
= control target key end

     0   :  { %8 = vsyncpa [#allocation3], 0  ;;  %s668_s0 = inlined_call_operand.vmem [shape: f32[2,8,32], index: 0, kind: input, shape index: {}]   ;;  %s669_s1 = inlined_call_operand.vmem [shape: f32[32,64], index: 1, kind: input, shape index: {}]   ;;  %s670_s2 = inlined_call_operand.vmem [shape: f32[1,64], index: 2, kind: input, shape index: {}]   ;;  %s671_s3 = inlined_call_operand.hbm [shape: f32[2,8,64], index: 3, kind: output, shape index: {}]  }
   0x1   :  { %10 = vsyncpa [#allocation3 + $0x1], 0  ;;  %s556_s12 = smov 0   ;;  %s558_s13 = smov 0  }
   0x2   :  { %s560_s14 = smov 0   ;;  %s562_s15 = smov 0  }
   0x3   :  { %s564_s16 = smov 0   ;;  %s566_s17 = smov 0  }
   0x4 LB: > { %s386_s18 = sadd.s32 4294967295, %s534_s17   ;;  %s387_s19 = sadd.s32 4294967294, %s534_s17   ;;  %s534_s17 = sphi %s566_s17, %s16_s17   ;;  %s530_s16 = sphi %s564_s16, %s678_s16   ;;  %s526_s15 = sphi %s562_s15, %s677_s15   ;;  %s522_s14 = sphi %s560_s14, %s676_s14   ;;  %s518_s13 = sphi %s558_s13, %s675_s13   ;;  %s514_s12 = sphi %s556_s12, %s674_s12  }
   0x5   : > { %s31_s20 = sadd.s32 1, %s530_s16  ;;  %s126_s21 = sadd.s32 1, %s522_s14 }
   0x6   : > { %p33_p0 = scmp.ge.s32.totalorder %s31_s20, 2  ;;  %p136_p1 = scmp.ne.s32.totalorder %s522_s14, %s518_s13 }
   0x7   : > { %p137_p2 = scmp.eq.s32.totalorder %s386_s18, 1  ;;  %p142_p3 = scmp.ne.s32.totalorder %s518_s13, %s514_s12 }
   0x8   : > { %s680_s20 = smov (%p33_p0, %s31_s20), 0  ;;  %p143_p5 = scmp.eq.s32.totalorder %s387_s19, 1 }
   0x9   : > { %p596_p4 = por %p137_p2, %p136_p1  ;;  %s119_s23 = ssub.s32 %s530_s16, %s680_s20 }
   0xa   : > { %p392_p6 = scmp.ge.s32.totalorder %s534_s17, 1  ;;  %p124_p7 = scmp.eq.s32.totalorder %s119_s23, 0 }
   0xb   : > { %p603_p8 = por %p143_p5, %p142_p3  ;;  %p184_p9 = scmp.lt.s32.totalorder %s534_s17, 3 }
   0xc   : > { %s609_s25 = scalar_select %p124_p7, %s522_s14, %s126_s21  }
   0xd   : > { %p185_p10 = pnand %p392_p6, %p184_p9 }
   0xe   : > { %p217_p11 = scmp.lt.s32.totalorder (!%p185_p10), %s526_s15, 1  ;;  %s214_s18 = sand.u32 (!%p185_p10), 1, %s518_s13  }
   0xf   : > { %188 = sbr.rel (%p185_p10) target bundleno = 159 (0x9f), region = 32  ;;  %s393_s19 = sshll.u32 (!%p185_p10), %s214_s18, 3 }
  0x10   : > { %s397_s21 = sshll.u32 (!%p185_p10), %s526_s15, 3  ;;  %s216_s30 = scalar_lea.vmem (!%p185_p10), [#allocation2], %s393_s19 }
  0x11   : > { %s279_s27 = scalar_lea.hbm (!%p185_p10), %s671_s3, %s397_s21  ;;  %s281_s4 = sshll.u32 (!%p185_p10), %s216_s30, 4  ;;  %s282_s4 = int_to_ptr.vmem [resolvable:$true] %s281_s4 }
  0x12   : > { %s267_s6 = scalar_lea.sflag (!%p185_p10), [#allocation3], %s214_s18  ;;  %s476_s10 = scalar_lea.hbm (!%p185_p10), %s671_s3, 16 }
  0x14   : > { %v235_v0 = vld [vmem:[%s669_s1 + $0x18] sm:$0xff]  ;;  %v234_v1 = vld [vmem:[%s669_s1 + $0x10] sm:$0xff]  ;;  %v233_v2 = vld [vmem:[%s669_s1 + $0x8] sm:$0xff]  ;;  %s218_s5 = scalar_select %p217_p11, %s526_s15, 1  ;;  %vm240_vm0 = vcmask 261120   ;;  %vm264_vm1 = vcmask 523264  }
  0x15   : > { %256 = vmatpush.msra.mxu0 %v235_v0  ;;  %v232_v3 = vld [vmem:[%s669_s1] sm:$0xff] }
  0x16   : > { %s394_s8 = sshll.u32 %s218_s5, 3  ;;  %v455_v5 = vld [vmem:[%s670_s2] ss:$0 sm:$0xff]  ;;  %s283_s5 = sshll.u32 %s279_s27, 4  ;;  %s284_s5 = int_to_ptr.hbm [resolvable:$true] %s283_s5 }
  0x17   : > { %257 = vmatpush.msra.mxu0 %v234_v1  ;;  %s223_s11 = scalar_lea.vmem %s668_s0, %s394_s8  ;;  %s470_s15 = sshra.s32 %s284_s5, 4  ;;  %s471_s15 = int_to_ptr.hbm [resolvable:$true] %s470_s15 }
  0x18   : > { %v231_v4 = vld [vmem:[%s223_s11] sm:$0xff]  ;;  %s472_s7 = scalar_lea.hbm %s471_s15, 8  ;;  %p477_p1 = scmp.lt.s32.totalorder %s471_s15, %s671_s3 }
  0x19   : > { %258 = vmatpush.msra.mxu0 %v233_v2  ;;  %p473_p12 = scmp.ne.s32.totalorder %s471_s15, %s472_s7  ;;  %p478_p2 = scmp.lt.s32.totalorder %s476_s10, %s472_s7 }
  0x1b   : > { %259 = vmatpush.msra.mxu0 %v232_v3  ;;  %p474_p13 = pnand %p473_p12, %p596_p4  ;;  %p479_p3 = por %p478_p2, %p477_p1 }
  0x1c   : > { %395 = vmatmul.msk.f32.vlgmr.msra.gmra.mxu0 %vm240_vm0, %v231_v4 }
  0x1d   : > { %p475_p0 = pneg %p474_p13 }
  0x1f   : > { %p480_p5 = pnand %p479_p3, %p475_p0 }
  0x99   : > { %v261_v6 = vpop.f32.mrf.mxu0 }
  0x9a   : > { %v262_v7 = vadd.f32 %v455_v5, %v261_v6 }
  0x9c   : > { %265 = vst.msk [vmem:[%s216_s30] sm:$0xff] %vm264_vm1, %v262_v7 }
  0x9d   : > { %483 = shalt.err (!%p480_p5)
}
  0x9e   : > { %400 = dma.vmem_to_hbm [thread:$0]  (%p596_p4), %s282_s4, 128, %s284_s5, %s267_s6  }
  0x9f PF: > { %p406_p6 = scmp.ge.s32.totalorder %s534_s17, 2  ;;  %s295_s18 = sand.u32 1, %s514_s12  }
  0xa0   : > { %s296_s21 = scalar_lea.sflag [#allocation3], %s295_s18 }
  0xa1   : > { %p403_p7 = pnand %p406_p6, %p603_p8 }
  0xa3   : > { %p404_p9 = pneg %p403_p7 }
  0xa5   : > { %509 = dma.done.wait (%p404_p9), %s296_s21, 128  }
  0xa6   : > { %511 = vsyncadd (%p404_p9), %s296_s21, 4294967168  ;;  %s16_s17 = sadd.s32 1, %s534_s17   ;;  %s674_s12 = smov %s518_s13 }
  0xa7   : > { %p13_p10 = scmp.ge.s32.totalorder %s16_s17, 4   ;;  %s675_s13 = smov %s522_s14 }
  0xa8   : > { %s676_s14 = smov %s609_s25  ;;  %s677_s15 = smov %s530_s16 }
  0xa9   : > { %s678_s16 = smov %s680_s20  ;;  %15 = sbr.rel (!%p13_p10) target bundleno = 4 (0x4), region = 73 }
  0xae   :  { %302 = vsyncpa [#allocation3], 1 }
  0xaf   :  { %304 = vsyncpa [#allocation3 + $0x1], 1 }

// kernel: transformer_decoder_forward.9
= control target key start
LH: loop header
LB: loop body
LE: loop exit
PB: predicated region body
PF: predicated region fallthrough
CT: control target
= control target key end

     0   :  { %s775_s13 = smov 0   ;;  %s777_s14 = smov 0   ;;  %s889_s0 = inlined_call_operand.vmem [shape: f32[2,8,32], index: 0, kind: input, shape index: {}]   ;;  %s890_s1 = inlined_call_operand.vmem [shape: f32[2,8,32], index: 1, kind: input, shape index: {}]   ;;  %s891_s2 = inlined_call_operand.vmem [shape: f32[32,32], index: 2, kind: input, shape index: {}]   ;;  %s892_s3 = inlined_call_operand.vmem [shape: f32[1,32], index: 3, kind: input, shape index: {}]   ;;  %s893_s4 = inlined_call_operand.vmem [shape: f32[1,32], index: 4, kind: input, shape index: {}]   ;;  %s894_s5 = inlined_call_operand.vmem [shape: f32[1,32], index: 5, kind: input, shape index: {}]   ;;  %s895_s6 = inlined_call_operand.vmem [shape: f32[32,64], index: 6, kind: input, shape index: {}]   ;;  %s896_s7 = inlined_call_operand.vmem [shape: f32[1,64], index: 7, kind: input, shape index: {}]   ;;  %s897_s8 = inlined_call_operand.vmem [shape: f32[64,32], index: 8, kind: input, shape index: {}]   ;;  %s898_s9 = inlined_call_operand.vmem [shape: f32[1,32], index: 9, kind: input, shape index: {}]   ;;  %s899_s10 = inlined_call_operand.vmem [shape: f32[2,8,32], index: 10, kind: output, shape index: {}]  }
   0x1   :  { %s779_s15 = smov 0  }
   0x2 LB: > { %s32_s16 = sadd.s32 1, %s713_s14  ;;  %p652_p0 = scmp.ge.s32.totalorder %s717_s15, 1  ;;  %s717_s15 = sphi %s779_s15, %s20_s15   ;;  %s713_s14 = sphi %s777_s14, %s901_s14   ;;  %s709_s13 = sphi %s775_s13, %s900_s13  }
   0x3   : > { %p34_p1 = scmp.ge.s32.totalorder %s32_s16, 2  ;;  %p344_p2 = scmp.lt.s32.totalorder %s717_s15, 3 }
   0x5   : > { %s903_s16 = smov (%p34_p1, %s32_s16), 0  ;;  %p345_p3 = pnand %p652_p0, %p344_p2 }
   0x6   : > { %p393_p4 = scmp.lt.s32.totalorder (!%p345_p3), %s709_s13, 1 }
   0x7   : > { %348 = sbr.rel (%p345_p3) target bundleno = 685 (0x2ad), region = 60 }
   0xc   : > { %v419_v0 = vld [vmem:[%s891_s2 + $0x18] sm:$0xff]  ;;  %v418_v1 = vld [vmem:[%s891_s2 + $0x10] sm:$0xff]  ;;  %v417_v2 = vld [vmem:[%s891_s2 + $0x8] sm:$0xff]  ;;  %s905_s13 = smov (!%p393_p4, %s709_s13), 1  ;;  %vm420_vm0 = vcmask 261120   ;;  %v719_v11 = vmov 32.0  }
   0xd   : > { %436 = vmatpush.msra.mxu0 %v419_v0  ;;  %v416_v3 = vld [vmem:[%s891_s2] sm:$0xff]  ;;  %s805_s25 = sshll.u32 %s905_s13, 3  ;;  %691 = vrcp.f32 %v719_v11  ;;  %v492_v23 = vld [vmem:[%s895_s6 + $0x18] sm:$0xff]  ;;  %v491_v24 = vld [vmem:[%s895_s6 + $0x10] sm:$0xff]  ;;  %vm533_vm5 = vcmask 523264  }
   0xe   : > { %s406_s28 = scalar_lea.vmem %s890_s1, %s805_s25  ;;  %s399_s11 = scalar_lea.vmem %s889_s0, %s805_s25  ;;  %v686_v6 = vld [vmem:[%s892_s3] ss:$0 sm:$0xff]  ;;  %512 = vmatpush.msra.mxu1 %v492_v23  ;;  %v490_v25 = vld [vmem:[%s895_s6 + $0x8] sm:$0xff]  ;;  %v528_v27 = vld [vmem:[%s897_s8 + $0x38] sm:$0xff] }
   0xf   : > { %437 = vmatpush.msra.mxu0 %v418_v1  ;;  %v415_v4 = vld [vmem:[%s406_s28] sm:$0xff]  ;;  %v527_v28 = vld [vmem:[%s897_s8 + $0x30] sm:$0xff]  ;;  %545 = vmatpush.msra.mxu2 %v528_v27  ;;  %v526_v29 = vld [vmem:[%s897_s8 + $0x28] sm:$0xff]  ;;  %s413_s19 = scalar_lea.vmem %s899_s10, %s805_s25 }
  0x10   : > { %v414_v5 = vld [vmem:[%s399_s11] sm:$0xff]  ;;  %513 = vmatpush.msra.mxu1 %v491_v24  ;;  %v524_v34 = vld [vmem:[%s897_s8 + $0x18] sm:$0xff]  ;;  %v523_v47 = vld [vmem:[%s897_s8 + $0x10] sm:$0xff] }
  0x11   : > { %438 = vmatpush.msra.mxu0 %v417_v2  ;;  %v489_v26 = vld [vmem:[%s895_s6] sm:$0xff]  ;;  %546 = vmatpush.msra.mxu2 %v527_v28  ;;  %v522_v48 = vld [vmem:[%s897_s8 + $0x8] sm:$0xff] }
  0x12   : > { %514 = vmatpush.msra.mxu1 %v490_v25  ;;  %v525_v32 = vld [vmem:[%s897_s8 + $0x20] sm:$0xff] }
  0x13   : > { %439 = vmatpush.msra.mxu0 %v416_v3  ;;  %v692_v12 = vpop.eup %691  ;;  %547 = vmatpush.msra.mxu2 %v526_v29  ;;  %v687_v41 = vld [vmem:[%s893_s4] ss:$0 sm:$0xff] }
  0x14   : > { %656 = vmatmul.msk.f32.vlgmr.msra.gmra.mxu0 %vm420_vm0, %v415_v4  ;;  %v456_v13 = vmul.f32 32.0, %v692_v12  ;;  %vm460_vm1 = vweird.f32 %v692_v12  ;;  %515 = vmatpush.msra.mxu1 %v489_v26  ;;  %v688_v44 = vld [vmem:[%s894_s5] ss:$0 sm:$0xff] }
  0x15   : > { %548 = vmatpush.msra.mxu2 %v525_v32  ;;  %v521_v49 = vld [vmem:[%s897_s8] sm:$0xff] }
  0x16   : > { %v457_v14 = vsub.f32 1.0, %v456_v13  ;;  %v689_v50 = vld [vmem:[%s896_s7] ss:$0 sm:$0xff] }
  0x17   : > { %549 = vmatpush.msra.mxu2 %v524_v34  ;;  %v690_v54 = vld [vmem:[%s898_s9] ss:$0 sm:$0xff] }
  0x18   : > { %v458_v15 = vmul.f32 %v692_v12, %v457_v14 }
  0x19   : > { %550 = vmatpush.msra.mxu2 %v523_v47 }
  0x1a   : > { %v459_v16 = vadd.f32 %v692_v12, %v458_v15 }
  0x1b   : > { %551 = vmatpush.msra.mxu2 %v522_v48 }
  0x1c   : > { %v461_v17 = vsel %vm460_vm1, %v692_v12, %v459_v16 }
  0x1d   : > { %552 = vmatpush.msra.mxu2 %v521_v49 }
  0x91   : > { %v441_v7 = vpop.f32.mrf.mxu0 }
  0x92   : > { %v444_v8 = vadd.f32 %v441_v7, %v414_v5 }
  0x94   : > { %v819_v9 = vadd.f32 %v686_v6, %v444_v8 }
  0x96   : > { %v452_v10 = vsel %vm420_vm0, %v819_v9, 0.0 }
  0x97   : > { %453 = vadd.xlane.f32.xlu0 %v452_v10 }
 0x10a   : > { %v454_v18 = vpop.xlane.xlu0 %453 }
 0x10b   : > { %v462_v19 = vmul.f32 %v461_v17, %v454_v18 }
 0x10d   : > { %v463_v20 = vsub.f32 %v819_v9, %v462_v19 }
 0x10f   : > { %v464_v21 = vmul.f32 %v463_v20, %v463_v20 }
 0x111   : > { %v465_v22 = vsel %vm420_vm0, %v464_v21, 0.0 }
 0x112   : > { %466 = vadd.xlane.f32.xlu0 %v465_v22 }
 0x185   : > { %v467_v30 = vpop.xlane.xlu0 %466 }
 0x186   : > { %v468_v31 = vmul.f32 %v467_v30, %v461_v17 }
 0x188   : > { %v469_v33 = vadd.f32 1e-05, %v468_v31 }
 0x18a   : > { %693 = vrsqrt.f32 %v469_v33  ;;  %vm476_vm3 = vweird.f32 %v469_v33 }
 0x190   : > { %v694_v35 = vpop.eup %693 }
 0x191   : > { %v471_v36 = vmul.f32 %v694_v35, %v469_v33  ;;  %vm477_vm2 = vweird.f32 %v694_v35 }
 0x192   : > { %vm478_vm4 = vmor %vm476_vm3, %vm477_vm2 }
 0x193   : > { %v472_v37 = vmul.f32 %v694_v35, %v471_v36 }
 0x195   : > { %v473_v38 = vmul.f32 0.5, %v472_v37 }
 0x197   : > { %v474_v39 = vsub.f32 1.5, %v473_v38 }
 0x199   : > { %v475_v40 = vmul.f32 %v694_v35, %v474_v39 }
 0x19b   : > { %v479_v42 = vsel %vm478_vm4, %v694_v35, %v475_v40 }
 0x19c   : > { %v480_v43 = vmul.f32 %v479_v42, %v463_v20 }
 0x19e   : > { %v484_v45 = vmul.f32 %v687_v41, %v480_v43 }
 0x1a0   : > { %v488_v46 = vadd.f32 %v688_v44, %v484_v45 }
 0x1a2   : > { %657 = vmatmul.msk.f32.vlgmr.msra.gmra.mxu1 %vm420_vm0, %v488_v46 }
 0x21f   : > { %v517_v51 = vpop.f32.mrf.mxu1 }
 0x220   : > { %v518_v52 = vadd.f32 %v689_v50, %v517_v51 }
 0x222   : > { %v520_v53 = vmax.f32 %v518_v52, 0.0 }
 0x224   : > { %658 = vmatmul.msk.f32.vlgmr.msra.gmra.mxu2 %vm533_vm5, %v520_v53 }
 0x2a7   : > { %v554_v55 = vpop.f32.mrf.mxu2 }
 0x2a8   : > { %v555_v56 = vadd.f32 %v690_v54, %v554_v55 }
 0x2aa   : > { %v557_v57 = vadd.f32 %v555_v56, %v819_v9 }
 0x2ac   : > { %558 = vst.msk [vmem:[%s413_s19] sm:$0xff] %vm420_vm0, %v557_v57 }
 0x2ad PF: > { %s20_s15 = sadd.s32 1, %s717_s15   ;;  %s900_s13 = smov %s713_s14 }
 0x2ae   : > { %p17_p5 = scmp.ge.s32.totalorder %s20_s15, 4   ;;  %s901_s14 = smov %s903_s16 }
 0x2b0   :  { %19 = sbr.rel (!%p17_p5) target bundleno = 2 (0x2), region = 93 }

// kernel: transformer_decoder_forward.8
= control target key start
LH: loop header
LB: loop body
LE: loop exit
PB: predicated region body
PF: predicated region fallthrough
CT: control target
= control target key end

     0   :  { %s1425_s12 = smov 0   ;;  %s1427_s13 = smov 0   ;;  %s1550_s0 = inlined_call_operand.vmem [shape: f32[2,8,32], index: 0, kind: input, shape index: {}]   ;;  %s1551_s1 = inlined_call_operand.vmem [shape: f32[2,8,32], index: 1, kind: input, shape index: {}]   ;;  %s1552_s2 = inlined_call_operand.vmem [shape: f32[2,8,32], index: 2, kind: input, shape index: {}]   ;;  %s1553_s3 = inlined_call_operand.vmem [shape: f32[2,8,32], index: 3, kind: output, shape index: {}]  }
   0x1   :  { %s1429_s14 = smov 0  }
   0x2 LB: > { %s39_s15 = sadd.s32 1, %s1390_s13  ;;  %p1281_p0 = scmp.ge.s32.totalorder %s1394_s14, 1  ;;  %s1394_s14 = sphi %s1429_s14, %s13_s14   ;;  %s1390_s13 = sphi %s1427_s13, %s1555_s13   ;;  %s1386_s12 = sphi %s1425_s12, %s1554_s12  }
   0x3   : > { %p41_p1 = scmp.ge.s32.totalorder %s39_s15, 2  ;;  %p230_p2 = scmp.lt.s32.totalorder %s1394_s14, 3 }
   0x5   : > { %s1557_s15 = smov (%p41_p1, %s39_s15), 0  ;;  %p231_p3 = pnand %p1281_p0, %p230_p2 }
   0x6   : > { %p288_p4 = scmp.lt.s32.totalorder (!%p231_p3), %s1386_s12, 1  ;;  %s1396_s23 = smov (!%p231_p3), 120  }
   0x7   : > { %234 = sbr.rel (%p231_p3) target bundleno = 1115 (0x45b), region = 32  ;;  %s1397_s24 = smov (!%p231_p3), 112  }
   0x8   : > { %s1398_s25 = smov (!%p231_p3), 104   ;;  %s1402_s29 = smov (!%p231_p3), 8  }
   0x9   : > { %s1403_s6 = smov (!%p231_p3), 24   ;;  %s1404_s7 = smov (!%p231_p3), 16  }
   0xc   : > { %s1559_s12 = smov (!%p288_p4, %s1386_s12), 1  ;;  %vm349_vm0 = vcmask 64512   ;;  %vm340_vm1 = vcmask 7168   ;;  %v1399_v2 = vmov -1e+30   ;;  %v751_v3 = vlaneseq }
   0xd   : > { %s1443_s16 = sshll.u32 %s1559_s12, 3  ;;  %341 = vst.msk [vmem:[#allocation2] sm:$0xff] %vm340_vm1, %v1399_v2  ;;  %v1400_v9 = vmov 0   ;;  %v1401_v10 = vmov 0.0   ;;  %vm1116_vm3 = vcmask 130112   ;;  %vm1131_vm4 = vcmask 195712  }
   0xe   : > { %s309_s19 = scalar_lea.vmem %s1551_s1, %s1443_s16  ;;  %s297_s22 = scalar_lea.vmem %s1550_s0, %s1443_s16  ;;  %342 = vst.msk [vmem:[#allocation2 + $0x8] sm:$0xff] %vm340_vm1, %v1399_v2  ;;  %v1465_v4 = vshrl.u32 %v751_v3, 7  ;;  %v1467_v5 = vand.u32 127, %v751_v3  ;;  %1345 = vset.pattern.permute.xlu0 %v1400_v9  ;;  %1346 = vset.pattern.permute.xlu2 %v1400_v9  ;;  %vm1146_vm5 = vcmask 261312  }
   0xf   : > { %v721_v0 = vld [vmem:[%s309_s19] sm:$0xff]  ;;  %343 = vst.msk [vmem:[#allocation2 + $0x10] sm:$0xff] %vm340_vm1, %v1399_v2  ;;  %1347 = vset.pattern.permute.xlu1 %v1400_v9  ;;  %s323_s28 = scalar_lea.vmem %s1552_s2, %s1443_s16  ;;  %s335_s5 = scalar_lea.vmem %s1553_s3, %s1443_s16 }
  0x10   : > { %1298 = vmatpush.xpose.msk.msra.mxu0 %vm349_vm0, %v721_v0  ;;  %v720_v1 = vld [vmem:[%s297_s22] sm:$0xff]  ;;  %821 = vrot.lane.b32.xlu1 %v721_v0, %s1396_s23  ;;  %344 = vst.msk [vmem:[#allocation2 + $0x18] sm:$0xff] %vm340_vm1, %v1399_v2  ;;  %vm760_vm2 = vcmp.le.s32.totalorder %v1467_v5, %v1465_v4 }
  0x11   : > { %913 = vrot.lane.b32.xlu2 %v721_v0, %s1397_s24  ;;  %350 = vst.msk [vmem:[#allocation4] sm:$0xff] %vm349_vm0, %v1401_v10  ;;  %v722_v20 = vld [vmem:[%s323_s28] sm:$0xff] }
  0x12   : > { %345 = vst.msk [vmem:[#allocation3] sm:$0xff] %vm340_vm1, %v1401_v10  ;;  %811 = vmatpush.msra.mxu1 %v722_v20 }
  0x13   : > { %1299 = vmatmul.msk.f32.vlgmr.msra.gmra.mxu0 %vm349_vm0, %v720_v1  ;;  %346 = vst.msk [vmem:[#allocation3 + $0x8] sm:$0xff] %vm340_vm1, %v1401_v10 }
  0x14   : > { %347 = vst.msk [vmem:[#allocation3 + $0x10] sm:$0xff] %vm340_vm1, %v1401_v10  ;;  %v762_v16 = vld [vmem:[#allocation2] sm:$0xff] }
  0x15   : > { %348 = vst.msk [vmem:[#allocation3 + $0x18] sm:$0xff] %vm340_vm1, %v1401_v10  ;;  %v849_v32 = vld [vmem:[#allocation2 + $0x8] sm:$0xff] }
  0x16   : > { %351 = vst.msk [vmem:[#allocation4 + $0x8] sm:$0xff] %vm349_vm0, %v1401_v10  ;;  %v941_v49 = vld [vmem:[#allocation2 + $0x10] sm:$0xff] }
  0x17   : > { %352 = vst.msk [vmem:[#allocation4 + $0x10] sm:$0xff] %vm349_vm0, %v1401_v10  ;;  %v1032_v37 = vld [vmem:[#allocation2 + $0x18] sm:$0xff] }
  0x18   : > { %819 = vrot.lane.b32.xlu1 %v720_v1, %s1396_s23  ;;  %353 = vst.msk [vmem:[#allocation4 + $0x18] sm:$0xff] %vm349_vm0, %v1401_v10 }
  0x19   : > { %1004 = vrot.lane.b32.xlu2 %v721_v0, %s1398_s25  ;;  %v786_v0 = vld [vmem:[#allocation4] sm:$0xff] }
  0x20   : > { %911 = vrot.lane.b32.xlu1 %v720_v1, %s1397_s24 }
  0x21   : > { %1002 = vrot.lane.b32.xlu2 %v720_v1, %s1398_s25 }
  0x6b   : > { %v914_v12 = vpop.permute.xlu2 %913 }
  0x6c   : > { %1304 = vmatpush.xpose.msk.msrb.mxu1 %vm349_vm0, %v914_v12 }
  0x73   : > { %v1005_v14 = vpop.permute.xlu2 %1004 }
  0x74   : > { %1307 = vmatpush.xpose.msk.msrb.mxu0 %vm349_vm0, %v1005_v14 }
  0x7b   : > { %v1003_v15 = vpop.permute.xlu2 %1002 }
  0x7c   : > { %1308 = vmatmul.msk.f32.vlgmr.msrb.gmra.mxu0 %vm349_vm0, %v1003_v15  ;;  %v866_v15 = vld [vmem:[#allocation3 + $0x8] sm:$0xff] }
  0x82   : > { %v822_v11 = vpop.permute.xlu1 %821 }
  0x83   : > { %1301 = vmatpush.xpose.msk.msra.mxu2 %vm349_vm0, %v822_v11 }
  0x8a   : > { %v820_v13 = vpop.permute.xlu1 %819 }
  0x8b   : > { %1302 = vmatmul.msk.f32.vlgmr.msra.gmra.mxu2 %vm349_vm0, %v820_v13 }
  0x90   : > { %v747_v6 = vpop.f32.mrf.mxu0 }
  0x91   : > { %v761_v7 = vsel %vm760_vm2, %v747_v6, -1e+30 }
  0x92   : > { %v763_v8 = vsel %vm349_vm0, %v761_v7, -inf  ;;  %v912_v31 = vpop.permute.xlu1 %911 }
  0x93   : > { %764 = vmax.xlane.f32.xlu0 %v763_v8 }
  0xf9   : > { %v1027_v25 = vpop.f32.mrf.mxu0 }
  0xfa   : > { %v1030_v27 = vsel %vm760_vm2, %v1027_v25, -1e+30 }
  0xfb   : > { %v1033_v28 = vsel %vm349_vm0, %v1030_v27, -inf }
 0x106   : > { %v765_v17 = vpop.xlane.xlu0 %764 }
 0x107   : > { %v766_v18 = vmax.f32 %v762_v16, %v765_v17 }
 0x109   : > { %v767_v19 = vsub.f32 %v762_v16, %v766_v18  ;;  %818 = vst.msk [vmem:[#allocation2] sm:$0xff] %vm340_vm1, %v766_v18  ;;  %772 = vperm.xlu0 %1345, %v766_v18  }
 0x10b   : > { %v768_v44 = vmul.f32 1.442695, %v767_v19 }
 0x10e   : > { %v844_v21 = vpop.f32.mrf.mxu2 }
 0x10f   : > { %v847_v22 = vsel %vm760_vm2, %v844_v21, -1e+30 }
 0x110   : > { %v850_v24 = vsel %vm349_vm0, %v847_v22, -inf }
 0x111   : > { %851 = vmax.xlane.f32.xlu1 %v850_v24 }
 0x133   : > { %1034 = vmax.xlane.f32.xlu0 %v1033_v28 }
 0x147   : > { %882 = vrot.lane.b32.xlu0 %v722_v20, %s1396_s23 }
 0x17b   : > { %v773_v23 = vpop.permute.xlu0 %772 }
 0x17c   : > { %v775_v26 = vsub.f32 %v761_v7, %v773_v23 }
 0x17e   : > { %v776_v29 = vmul.f32 1.442695, %v775_v26  ;;  %v1057_v26 = vld [vmem:[#allocation4 + $0x18] sm:$0xff] }
 0x180   : > { %1348 = vpow2.f32 %v776_v29 }
 0x181   : > { %1350 = vpow2.f32 %v768_v44 }
 0x184   : > { %v852_v33 = vpop.xlane.xlu1 %851 }
 0x185   : > { %v853_v34 = vmax.f32 %v849_v32, %v852_v33 }
 0x186   : > { %v1501_v30 = vpop.eup %1348 }
 0x187   : > { %1300 = vmatmul.msk.f32.vlgmr.msra.gmra.mxu1 %vm349_vm0, %v1501_v30  ;;  %v854_v35 = vsub.f32 %v849_v32, %v853_v34  ;;  %910 = vst.msk [vmem:[#allocation2 + $0x8] sm:$0xff] %vm340_vm1, %v853_v34  ;;  %v1514_v46 = vpop.eup %1350  ;;  %v780_v5 = vsel %vm349_vm0, %v1501_v30, 0.0 }
 0x189   : > { %v855_v45 = vmul.f32 1.442695, %v854_v35  ;;  %v1049_v35 = vld [vmem:[#allocation3 + $0x18] sm:$0xff] }
 0x18b   : > { %1352 = vpow2.f32 %v855_v45 }
 0x18f   : > { %1305 = vmatmul.msk.f32.vlgmr.msrb.gmra.mxu1 %vm349_vm0, %v912_v31  ;;  %v778_v31 = vld [vmem:[#allocation3] sm:$0xff] }
 0x190   : > { %v779_v32 = vmul.f32 %v1514_v46, %v778_v31 }
 0x191   : > { %v1353_v47 = vpop.eup %1352 }
 0x192   : > { %v867_v16 = vmul.f32 %v1353_v47, %v866_v15 }
 0x1a6   : > { %v1035_v38 = vpop.xlane.xlu0 %1034 }
 0x1a7   : > { %v1036_v39 = vmax.f32 %v1032_v37, %v1035_v38 }
 0x1a9   : > { %v1037_v40 = vsub.f32 %v1032_v37, %v1036_v39  ;;  %1092 = vst.msk [vmem:[#allocation2 + $0x18] sm:$0xff] %vm340_vm1, %v1036_v39 }
 0x1ab   : > { %v1038_v63 = vmul.f32 1.442695, %v1037_v40 }
 0x1b9   : > { %v883_v48 = vpop.permute.xlu0 %882 }
 0x1ba   : > { %903 = vmatpush.msra.mxu3 %v883_v48  ;;  %v966_v48 = vld [vmem:[#allocation4 + $0x10] sm:$0xff] }
 0x204   : > { %v813_v36 = vpop.f32.mrf.mxu1 }
 0x20c   : > { %v936_v41 = vpop.f32.mrf.mxu1 }
 0x20d   : > { %v939_v42 = vsel %vm760_vm2, %v936_v41, -1e+30 }
 0x20e   : > { %v942_v43 = vsel %vm349_vm0, %v939_v42, -inf }
 0x20f   : > { %943 = vmax.xlane.f32.xlu2 %v942_v43  ;;  %v958_v43 = vld [vmem:[#allocation3 + $0x10] sm:$0xff] }
 0x227   : > { %859 = vperm.xlu2 %1346, %v853_v34  }
 0x22f   : > { %1042 = vperm.xlu2 %1346, %v1036_v39  }
 0x237   : > { %1064 = vrot.lane.b32.xlu2 %v722_v20, %s1398_s25 }
 0x23f   : > { %789 = vperm.xlu2 %1346, %v1514_v46  }
 0x247   : > { %877 = vperm.xlu2 %1346, %v1353_v47  }
 0x282   : > { %v944_v50 = vpop.xlane.xlu2 %943 }
 0x283   : > { %v945_v51 = vmax.f32 %v941_v49, %v944_v50 }
 0x285   : > { %v946_v52 = vsub.f32 %v941_v49, %v945_v51  ;;  %1001 = vst.msk [vmem:[#allocation2 + $0x10] sm:$0xff] %vm340_vm1, %v945_v51  ;;  %951 = vperm.xlu1 %1347, %v945_v51  }
 0x287   : > { %v947_v7 = vmul.f32 1.442695, %v946_v52 }
 0x28a   : > { %v860_v53 = vpop.permute.xlu2 %859 }
 0x28b   : > { %v862_v54 = vsub.f32 %v847_v22, %v860_v53 }
 0x28d   : > { %v863_v55 = vmul.f32 1.442695, %v862_v54  ;;  %973 = vrot.lane.b32.xlu1 %v722_v20, %s1397_s24  ;;  %v874_v20 = vld [vmem:[#allocation4 + $0x8] sm:$0xff] }
 0x28f   : > { %1354 = vpow2.f32 %v863_v55 }
 0x292   : > { %v1043_v56 = vpop.permute.xlu2 %1042 }
 0x293   : > { %v1045_v57 = vsub.f32 %v1030_v27, %v1043_v56 }
 0x295   : > { %v1355_v58 = vpop.eup %1354  ;;  %v1046_v59 = vmul.f32 1.442695, %v1045_v57 }
 0x296   : > { %1303 = vmatmul.msk.f32.vlgmr.msra.gmra.mxu3 %vm349_vm0, %v1355_v58  ;;  %v868_v60 = vsel %vm349_vm0, %v1355_v58, 0.0 }
 0x297   : > { %1356 = vpow2.f32 %v1046_v59  ;;  %869 = vadd.xlane.f32.xlu0 %v868_v60 }
 0x298   : > { %1358 = vpow2.f32 %v1038_v63 }
 0x299   : > { %1360 = vpow2.f32 %v947_v7 }
 0x29a   : > { %v1065_v61 = vpop.permute.xlu2 %1064 }
 0x29b   : > { %1085 = vmatpush.msrb.mxu2 %v1065_v61 }
 0x29d   : > { %v1357_v62 = vpop.eup %1356 }
 0x29e   : > { %1309 = vmatmul.msk.f32.vlgmr.msrb.gmra.mxu2 %vm349_vm0, %v1357_v62  ;;  %v1359_v4 = vpop.eup %1358  ;;  %v1051_v6 = vsel %vm349_vm0, %v1357_v62, 0.0 }
 0x29f   : > { %v1361_v8 = vpop.eup %1360 }
 0x2a0   : > { %v959_v44 = vmul.f32 %v1361_v8, %v958_v43 }
 0x2a2   : > { %v790_v1 = vpop.permute.xlu2 %789 }
 0x2a3   : > { %v792_v2 = vmul.f32 %v790_v1, %v786_v0 }
 0x2a5   : > { %v816_v3 = vadd.f32 %v813_v36, %v792_v2  ;;  %v1050_v36 = vmul.f32 %v1359_v4, %v1049_v35 }
 0x2a7   : > { %817 = vst.msk [vmem:[#allocation4] sm:$0xff] %vm349_vm0, %v816_v3 }
 0x2aa   : > { %v878_v21 = vpop.permute.xlu2 %877 }
 0x2ab   : > { %1060 = vperm.xlu0 %1345, %v1359_v4   ;;  %v880_v22 = vmul.f32 %v878_v21, %v874_v20 }
 0x2ae   : > { %v1093_v57 = vld [vmem:[#allocation4] sm:$0xff] }
 0x2b7   : > { %781 = vadd.xlane.f32.xlu1 %v780_v5 }
 0x2bf   : > { %1052 = vadd.xlane.f32.xlu1 %v1051_v6 }
 0x2d8   : > { %969 = vperm.xlu1 %1347, %v1361_v8  }
 0x2f7   : > { %v952_v9 = vpop.permute.xlu1 %951 }
 0x2f8   : > { %v954_v10 = vsub.f32 %v939_v42, %v952_v9 }
 0x2fa   : > { %v955_v11 = vmul.f32 1.442695, %v954_v10 }
 0x2fc   : > { %1362 = vpow2.f32 %v955_v11 }
 0x2ff   : > { %v974_v12 = vpop.permute.xlu1 %973 }
 0x300   : > { %994 = vmatpush.msrb.mxu3 %v974_v12 }
 0x302   : > { %v1363_v13 = vpop.eup %1362 }
 0x303   : > { %1306 = vmatmul.msk.f32.vlgmr.msrb.gmra.mxu3 %vm349_vm0, %v1363_v13  ;;  %v960_v14 = vsel %vm349_vm0, %v1363_v13, 0.0 }
 0x304   : > { %961 = vadd.xlane.f32.xlu2 %v960_v14 }
 0x30a   : > { %v870_v17 = vpop.xlane.xlu0 %869 }
 0x30b   : > { %v871_v18 = vadd.f32 %v870_v17, %v867_v16 }
 0x30d   : > { %872 = vst.msk [vmem:[#allocation3 + $0x8] sm:$0xff] %vm340_vm1, %v871_v18 }
 0x314   : > { %v1104_v19 = vld [vmem:[#allocation3 + $0x8] sm:$0xff] }
 0x315   : > { %1364 = vrcp.f32 %v1104_v19 }
 0x319   : > { %v905_v23 = vpop.f32.mrf.mxu3 }
 0x31a   : > { %v908_v24 = vadd.f32 %v905_v23, %v880_v22 }
 0x31b   : > { %v1365_v25 = vpop.eup %1364 }
 0x31c   : > { %909 = vst.msk [vmem:[#allocation4 + $0x8] sm:$0xff] %vm349_vm0, %v908_v24  ;;  %1108 = vperm.xlu0 %1345, %v1365_v25  }
 0x31d   : > { %v1061_v27 = vpop.permute.xlu0 %1060 }
 0x31e   : > { %v1063_v28 = vmul.f32 %v1061_v27, %v1057_v26 }
 0x321   : > { %v1087_v29 = vpop.f32.mrf.mxu2 }
 0x322   : > { %v1090_v30 = vadd.f32 %v1087_v29, %v1063_v28 }
 0x323   : > { %v1103_v55 = vld [vmem:[#allocation4 + $0x8] sm:$0xff] }
 0x324   : > { %1091 = vst.msk [vmem:[#allocation4 + $0x18] sm:$0xff] %vm349_vm0, %v1090_v30 }
 0x32a   : > { %v782_v33 = vpop.xlane.xlu1 %781 }
 0x32b   : > { %v783_v34 = vadd.f32 %v782_v33, %v779_v32  ;;  %v1133_v60 = vld [vmem:[#allocation4 + $0x18] sm:$0xff] }
 0x32d   : > { %785 = vst.msk [vmem:[#allocation3] sm:$0xff] %vm340_vm1, %v783_v34 }
 0x332   : > { %v1053_v37 = vpop.xlane.xlu1 %1052 }
 0x333   : > { %v1054_v38 = vadd.f32 %v1053_v37, %v1050_v36 }
 0x334   : > { %v1094_v39 = vld [vmem:[#allocation3] sm:$0xff] }
 0x335   : > { %1055 = vst.msk [vmem:[#allocation3 + $0x18] sm:$0xff] %vm340_vm1, %v1054_v38  ;;  %1366 = vrcp.f32 %v1094_v39 }
 0x33b   : > { %v1367_v40 = vpop.eup %1366 }
 0x33c   : > { %1098 = vperm.xlu2 %1346, %v1367_v40   ;;  %v1134_v41 = vld [vmem:[#allocation3 + $0x18] sm:$0xff] }
 0x33d   : > { %1368 = vrcp.f32 %v1134_v41 }
 0x343   : > { %v1369_v42 = vpop.eup %1368 }
 0x344   : > { %1138 = vperm.xlu0 %1345, %v1369_v42  }
 0x34a   : > { %v970_v49 = vpop.permute.xlu1 %969 }
 0x34b   : > { %v972_v50 = vmul.f32 %v970_v49, %v966_v48 }
 0x377   : > { %v962_v45 = vpop.xlane.xlu2 %961 }
 0x378   : > { %v963_v46 = vadd.f32 %v962_v45, %v959_v44 }
 0x37a   : > { %964 = vst.msk [vmem:[#allocation3 + $0x10] sm:$0xff] %vm340_vm1, %v963_v46 }
 0x381   : > { %v1119_v47 = vld [vmem:[#allocation3 + $0x10] sm:$0xff] }
 0x382   : > { %1370 = vrcp.f32 %v1119_v47 }
 0x386   : > { %v996_v51 = vpop.f32.mrf.mxu3 }
 0x387   : > { %v999_v52 = vadd.f32 %v996_v51, %v972_v50 }
 0x388   : > { %v1371_v53 = vpop.eup %1370 }
 0x389   : > { %1000 = vst.msk [vmem:[#allocation4 + $0x10] sm:$0xff] %vm349_vm0, %v999_v52  ;;  %1123 = vperm.xlu1 %1347, %v1371_v53  }
 0x38e   : > { %v1109_v54 = vpop.permute.xlu0 %1108 }
 0x38f   : > { %v1111_v56 = vmul.f32 %v1109_v54, %v1103_v55 }
 0x390   : > { %v1118_v63 = vld [vmem:[#allocation4 + $0x10] sm:$0xff] }
 0x391   : > { %1113 = vrot.lane.b32.xlu1 %v1111_v56, %s1402_s29 }
 0x396   : > { %v1099_v58 = vpop.permute.xlu2 %1098 }
 0x397   : > { %v1101_v59 = vmul.f32 %v1099_v58, %v1093_v57 }
 0x399   : > { %1102 = vst.msk [vmem:[%s335_s5] sm:$0xff] %vm349_vm0, %v1101_v59 }
 0x3b6   : > { %v1139_v61 = vpop.permute.xlu0 %1138 }
 0x3b7   : > { %v1141_v62 = vmul.f32 %v1139_v61, %v1133_v60 }
 0x3b9   : > { %1143 = vrot.lane.b32.xlu0 %v1141_v62, %s1403_s6 }
 0x3fb   : > { %v1124_v0 = vpop.permute.xlu1 %1123 }
 0x3fc   : > { %v1126_v1 = vmul.f32 %v1124_v0, %v1118_v63 }
 0x3fe   : > { %1128 = vrot.lane.b32.xlu2 %v1126_v1, %s1404_s7 }
 0x403   : > { %v1114_v2 = vpop.permute.xlu1 %1113 }
 0x404   : > { %1117 = vst.msk [vmem:[%s335_s5] sm:$0xff] %vm1116_vm3, %v1114_v2 }
 0x42b   : > { %v1144_v4 = vpop.permute.xlu0 %1143 }
 0x458   : > { %v1129_v3 = vpop.permute.xlu2 %1128 }
 0x459   : > { %1132 = vst.msk [vmem:[%s335_s5] sm:$0xff] %vm1131_vm4, %v1129_v3 }
 0x45a   : > { %1147 = vst.msk [vmem:[%s335_s5] sm:$0xff] %vm1146_vm5, %v1144_v4 }
 0x45b PF: > { %s13_s14 = sadd.s32 1, %s1394_s14   ;;  %s1554_s12 = smov %s1390_s13 }
 0x45c   : > { %p10_p5 = scmp.ge.s32.totalorder %s13_s14, 4   ;;  %s1555_s13 = smov %s1557_s15 }
 0x45e   :  { %12 = sbr.rel (!%p10_p5) target bundleno = 2 (0x2), region = 98 }

</bundles_post_ra>
